<compile_context>
chip_gen: v7x
topology: tpu7x:2x2x1
jax: 0.10.0
libtpu: 0.0.40
codegen_flags: <defaults>
</compile_context>

<pallas_src>
import jax
import jax.numpy as jnp
from jax import lax
from jax.experimental import pallas as pl
from jax.experimental.pallas import tpu as pltpu

# ---- module constants (PositionalEncoding2D defaults + embedding vocabularies)
MINPOS, MAXPOS = -32, 32
MINCHAIN, MAXCHAIN = -2, 2
NBIN = abs(MINPOS) + MAXPOS + 1          # 65
NCBIN = abs(MINCHAIN) + MAXCHAIN + 1     # 5
N_AA = 22                                # nn.Embedding(22, ...)
N_EPI = 2                                # nn.Embedding(2, ...)

_OFF_CHAIN = NBIN                        # chain rows start at 65 in the pos/chain table
_PC_ROWS = 128                           # pad pos(65)+chain(5) to a full MXU depth

# Leave headroom under v7x's 64 MiB physical VMEM (fine on v5e/v6e's 128 MiB).
_VMEM_LIMIT_BYTES = 48 * 1024 * 1024


# --------------------------------------------------------------------------
# Pair embedding kernel
# --------------------------------------------------------------------------
def _pair_kernel(idx_i_ref, idxp_j_ref, cid_i_ref, cidp_j_ref,
                 seq_i_ref, seq_j_ref, epi_i_ref, epi_j_ref,
                 pc_tbl_ref, left_tbl_ref, right_tbl_ref, out_ref):
    ti = idx_i_ref.shape[1]
    tj = idxp_j_ref.shape[2]
    D = pc_tbl_ref.shape[1]

    idx_i = idx_i_ref[0]          # (ti, 1) int32
    idxp_j = idxp_j_ref[0]        # (1, tj) int32, pre-offset: idx - MINPOS
    cid_i = cid_i_ref[0]          # (ti, 1)
    cidp_j = cidp_j_ref[0]        # (1, tj), pre-offset: chain - MINCHAIN + _OFF_CHAIN

    # torch.bucketize(x, arange(min,max)) (right=False) on ints == clip(x-min, 0, nbin-1)
    ib = jnp.clip(idxp_j - idx_i, 0, NBIN - 1)                           # pos lane
    ic = jnp.clip(cidp_j - cid_i, _OFF_CHAIN, _OFF_CHAIN + NCBIN - 1)    # chain lane

    # Pairwise 2-hot (pos + chain) x 128-row table on the MXU (bf16 by default:
    # the 0/1 one-hot is exact; only the table values are rounded).
    lane = lax.broadcasted_iota(jnp.int32, (ti, tj, _PC_ROWS), 2)
    hit = (lane == ib[:, :, None]) | (lane == ic[:, :, None])
    onehot = hit.astype(pc_tbl_ref.dtype).reshape(ti * tj, _PC_ROWS)     # leading merge
    pc = jnp.dot(onehot, pc_tbl_ref[...],
                 preferred_element_type=jnp.float32).reshape(ti, tj, D)  # leading split

    # Separable per-j (left) and per-i (right) terms: tiny exact 24-row 2-hot
    # gathers, computed once per tile and broadcast-added.
    jlane = lax.broadcasted_iota(jnp.int32, (tj, N_AA + N_EPI), 1)
    lhit = (jlane == seq_j_ref[0]) | (jlane == epi_j_ref[0])             # epi pre-offset +22
    left_j = jnp.dot(lhit.astype(left_tbl_ref.dtype), left_tbl_ref[...],
                     preferred_element_type=jnp.float32)                 # (tj, D)

    ilane = lax.broadcasted_iota(jnp.int32, (ti, N_AA + N_EPI), 1)
    rhit = (ilane == seq_i_ref[0]) | (ilane == epi_i_ref[0])
    right_i = jnp.dot(rhit.astype(right_tbl_ref.dtype), right_tbl_ref[...],
                      preferred_element_type=jnp.float32)                # (ti, D)

    res = pc + left_j[None, :, :] + right_i[:, None, :]
    out_ref[...] = res[None].astype(out_ref.dtype)


def _pick_pair_tiles(L, D, out_elem_bytes, target_bytes=6 * 1024 * 1024):
    """j tile: full rows (contiguous writeback) up to 1024 columns, else a
    multiple of 128 so the block layout stays legal and the per-step working
    set stays bounded at large L.  i tile: multiple of 8 sized so one output
    block is ~target_bytes (amortizes the ~0.35us/step grid overhead)."""
    tj = L if L <= 1024 else 1024
    rows = target_bytes // max(tj * D * out_elem_bytes, 1)
    ti = max(8, (rows // 8) * 8)
    if ti >= L:
        ti = L
    return int(ti), int(tj)


def pair_embedding(seq, idx, chain_idx, epi,
                   emb_left, emb_left_epi, emb_right, emb_right_epi,
                   pos_emb, chain_emb, *, ti=None, tj=None,
                   compute_dtype=jnp.bfloat16, out_dtype=jnp.float32):
    """pair = left + right + PositionalEncoding2D(idx, chain_idx) -> (B,L,L,D).

    compute_dtype: dtype of the pos/chain one-hot + table on the MXU (bf16
    default; use float32 for bit-level parity with PyTorch).
    out_dtype=jnp.bfloat16 is recommended when downstream tolerates it: this
    kernel is HBM-store-bound and bf16 halves writeback + output VMEM."""
    B, L = idx.shape
    D = pos_emb.shape[1]
    assert pos_emb.shape[0] == NBIN and chain_emb.shape[0] == NCBIN
    assert emb_left.shape == (N_AA, D) and emb_right.shape == (N_AA, D)
    assert emb_left_epi.shape == (N_EPI, D) and emb_right_epi.shape == (N_EPI, D)

    pc_table = jnp.concatenate(
        [pos_emb, chain_emb,
         jnp.zeros((_PC_ROWS - NBIN - NCBIN, D), pos_emb.dtype)],
        axis=0).astype(compute_dtype)                                # (128, D)
    left_table = jnp.concatenate([emb_left, emb_left_epi], axis=0).astype(jnp.float32)
    right_table = jnp.concatenate([emb_right, emb_right_epi], axis=0).astype(jnp.float32)

    out_bytes = jnp.dtype(out_dtype).itemsize
    dti, dtj = _pick_pair_tiles(L, D, out_bytes)
    if ti is None:
        ti = dti
    if tj is None:
        tj = dtj
    assert ti == L or ti % 8 == 0, (L, ti)
    assert tj == L or tj % 128 == 0, (L, tj)

    col = lambda a: a.reshape(B, L, 1).astype(jnp.int32)
    row = lambda a: a.reshape(B, 1, L).astype(jnp.int32)

    # Pre-add all constant table offsets in the wrapper (free) so the hot loop
    # compares directly against the raw refs.
    idx_i = col(idx)
    idxp_j = row(idx - MINPOS)
    cid_i = col(chain_idx)
    cidp_j = row(chain_idx - MINCHAIN + _OFF_CHAIN)
    seq_c = col(seq)
    epi_c = col(epi + N_AA)

    ispec = pl.BlockSpec((1, ti, 1), lambda b, it, jt: (b, it, 0))
    jspec_row = pl.BlockSpec((1, 1, tj), lambda b, it, jt: (b, 0, jt))
    jspec_col = pl.BlockSpec((1, tj, 1), lambda b, it, jt: (b, jt, 0))
    tspec = lambda n: pl.BlockSpec((n, D), lambda b, it, jt: (0, 0))

    return pl.pallas_call(
        _pair_kernel,
        out_shape=jax.ShapeDtypeStruct((B, L, L, D), out_dtype),
        grid_spec=pltpu.PrefetchScalarGridSpec(
            num_scalar_prefetch=0,
            grid=(B, pl.cdiv(L, ti), pl.cdiv(L, tj)),   # cdiv: no ti=L fallback at odd L
            in_specs=[ispec, jspec_row, ispec, jspec_row,
                      ispec, jspec_col, ispec, jspec_col,
                      tspec(_PC_ROWS), tspec(N_AA + N_EPI), tspec(N_AA + N_EPI)],
            out_specs=pl.BlockSpec((1, ti, tj, D),
                                   lambda b, it, jt: (b, it, jt, 0)),
        ),
        compiler_params=pltpu.CompilerParams(
            dimension_semantics=("parallel", "parallel", "parallel"),
            vmem_limit_bytes=_VMEM_LIMIT_BYTES),
    )(idx_i, idxp_j, cid_i, cidp_j, seq_c, seq_c, epi_c, epi_c,
      pc_table, left_table, right_table)


# --------------------------------------------------------------------------
# MSA embedding kernel: Linear(msa) + emb_q[seq]  (tiled over N)
# --------------------------------------------------------------------------
def _msa_kernel(msa_ref, seq_ref, w_ref, qb_ref, out_ref):
    tn, L, d_init = msa_ref.shape[1], msa_ref.shape[2], msa_ref.shape[3]
    d_msa = w_ref.shape[1]

    if tn == 1:                               # static branch (trace time)
        x = msa_ref[0, 0]                     # (L, d_init)
    else:
        x = msa_ref[0].reshape(tn * L, d_init)  # leading-dim merge -> one matmul
    lin = jnp.dot(x.astype(w_ref.dtype), w_ref[...],
                  preferred_element_type=jnp.float32)      # (tn*L, d_msa)

    # emb_q[seq] + bias: bias folded into the table (one-hot has exactly one 1),
    # computed once per (b, n-tile) instead of per (b, n).
    lane = lax.broadcasted_iota(jnp.int32, (L, qb_ref.shape[0]), 1)
    oh = (lane == seq_ref[0]).astype(qb_ref.dtype)          # (L, 22)
    q = jnp.dot(oh, qb_ref[...], preferred_element_type=jnp.float32)  # (L, d_msa)

    res = lin.reshape(tn, L, d_msa) + q[None]
    out_ref[...] = res[None].astype(out_ref.dtype)


def _pick_msa_tile(N, L, target_rows=4096):
    if L % 8 != 0:
        return 1          # avoid a relayout on the in-kernel (tn, L) merge
    tn = max(1, target_rows // max(L, 1))
    return min(tn, N)


def msa_embedding(msa, seq, w, b, emb_q, *, tn=None):
    B, N, L, d_init = msa.shape
    d_msa = w.shape[0]
    # msa is passed in its native dtype (no wrapper-side f32 copy); the matmul
    # runs in msa's precision with f32 accumulation (pass bf16 msa for the fast
    # MXU path, f32 for exact PyTorch parity).
    w_t = jnp.asarray(w.T, dtype=msa.dtype)                  # (d_init, d_msa)
    qb = (emb_q + b[None, :]).astype(jnp.float32)            # bias folded into emb_q
    seq_col = seq.reshape(B, L, 1).astype(jnp.int32)
    if tn is None:
        tn = _pick_msa_tile(N, L)

    return pl.pallas_call(
        _msa_kernel,
        out_shape=jax.ShapeDtypeStruct((B, N, L, d_msa), jnp.float32),
        grid_spec=pltpu.PrefetchScalarGridSpec(
            num_scalar_prefetch=0,
            grid=(B, pl.cdiv(N, tn)),
            in_specs=[
                pl.BlockSpec((1, tn, L, d_init), lambda bi, nt: (bi, nt, 0, 0)),
                pl.BlockSpec((1, L, 1), lambda bi, nt: (bi, 0, 0)),
                pl.BlockSpec((d_init, d_msa), lambda bi, nt: (0, 0)),
                pl.BlockSpec((N_AA, d_msa), lambda bi, nt: (0, 0)),
            ],
            out_specs=pl.BlockSpec((1, tn, L, d_msa), lambda bi, nt: (bi, nt, 0, 0)),
        ),
        compiler_params=pltpu.CompilerParams(
            dimension_semantics=("parallel", "parallel"),
            vmem_limit_bytes=_VMEM_LIMIT_BYTES),
    )(msa, seq_col, w_t, qb)


# --------------------------------------------------------------------------
# State embedding: intentionally NOT a Pallas kernel (per perf review)
# --------------------------------------------------------------------------
def state_embedding(seq, epi, emb_state, emb_epi):
    # Output is only (B, L, 32): below one lane width (masked stores) and
    # launch-overhead dominated as a kernel, so plain JAX is strictly cheaper.
    return jnp.take(emb_state, seq, axis=0) + jnp.take(emb_epi, epi, axis=0)


# --------------------------------------------------------------------------
# Full MSA_emb forward (Pallas) and plain-JAX reference
# --------------------------------------------------------------------------
def msa_emb_forward(msa, seq, idx, chain_idx, epi_info, p,
                    *, pair_compute_dtype=jnp.bfloat16,
                    pair_out_dtype=jnp.float32):
    msa_o = msa_embedding(msa, seq, p["w"], p["b"], p["emb_q"])
    pair = pair_embedding(seq, idx, chain_idx, epi_info,
                          p["emb_left"], p["emb_left_epi"],
                          p["emb_right"], p["emb_right_epi"],
                          p["pos_emb"], p["chain_emb"],
                          compute_dtype=pair_compute_dtype,
                          out_dtype=pair_out_dtype)
    state = state_embedding(seq, epi_info, p["emb_state"], p["emb_epi"])
    B, L = seq.shape
    return msa_o, pair, state.reshape(B, L, -1)   # state.view(B, L, -1)


def msa_emb_reference(msa, seq, idx, chain_idx, epi, p):
    hp = jax.lax.Precision.HIGHEST
    lin = jnp.einsum("bnli,oi->bnlo", msa, p["w"], precision=hp) + p["b"]
    msa_o = lin + jnp.take(p["emb_q"], seq, axis=0)[:, None]
    left = (jnp.take(p["emb_left"], seq, axis=0)[:, None]
            + jnp.take(p["emb_left_epi"], epi, axis=0)[:, None])
    right = (jnp.take(p["emb_right"], seq, axis=0)[:, :, None]
             + jnp.take(p["emb_right_epi"], epi, axis=0)[:, :, None])
    ib = jnp.clip(idx[:, None, :] - idx[:, :, None] - MINPOS, 0, NBIN - 1)
    ic = jnp.clip(chain_idx[:, None, :] - chain_idx[:, :, None] - MINCHAIN,
                  0, NCBIN - 1)
    pos = jnp.take(p["pos_emb"], ib, axis=0) + jnp.take(p["chain_emb"], ic, axis=0)
    pair = left + right + pos
    state = jnp.take(p["emb_state"], seq, axis=0) + jnp.take(p["emb_epi"], epi, axis=0)
    return msa_o, pair, state


def init_params(key, d_msa, d_pair, d_state, d_init):
    # The PyTorch reset_parameter() zeros several tables; we use non-zero
    # deterministic values so every path is exercised (forward semantics are
    # value-independent).
    ks = jax.random.split(key, 11)
    f = lambda k, shape: 0.1 * jax.random.normal(k, shape, dtype=jnp.float32)
    return dict(
        w=f(ks[0], (d_msa, d_init)), b=f(ks[1], (d_msa,)),
        emb_q=f(ks[2], (N_AA, d_msa)),
        emb_left=f(ks[3], (N_AA, d_pair)), emb_right=f(ks[4], (N_AA, d_pair)),
        emb_left_epi=f(ks[5], (N_EPI, d_pair)),
        emb_right_epi=f(ks[6], (N_EPI, d_pair)),
        emb_state=f(ks[7], (N_AA, d_state)), emb_epi=f(ks[8], (N_EPI, d_state)),
        pos_emb=f(ks[9], (NBIN, d_pair)), chain_emb=f(ks[10], (NCBIN, d_pair)),
    )


if __name__ == "__main__":
    B, N, L = 2, 4, 16
    D_MSA, D_PAIR, D_STATE, D_INIT = 256, 128, 32, 48   # module defaults

    key = jax.random.PRNGKey(0)
    k_msa, k_seq, k_idx, k_chain, k_epi, k_par = jax.random.split(key, 6)

    msa = jax.random.normal(k_msa, (B, N, L, D_INIT), dtype=jnp.float32)
    seq = jax.random.randint(k_seq, (B, L), 0, N_AA, dtype=jnp.int32)
    idx = jax.random.randint(k_idx, (B, L), 0, 200, dtype=jnp.int32)
    chain_idx = jax.random.randint(k_chain, (B, L), 0, 4, dtype=jnp.int32)
    epi_info = jax.random.randint(k_epi, (B, L), 0, N_EPI, dtype=jnp.int32)

    params = init_params(k_par, D_MSA, D_PAIR, D_STATE, D_INIT)

    fwd = jax.jit(msa_emb_forward)
    msa_o, pair_o, state_o = jax.block_until_ready(
        fwd(msa, seq, idx, chain_idx, epi_info, params))

    msa_r, pair_r, state_r = msa_emb_reference(msa, seq, idx, chain_idx,
                                               epi_info, params)

    assert msa_o.shape == (B, N, L, D_MSA), msa_o.shape
    assert pair_o.shape == (B, L, L, D_PAIR), pair_o.shape
    assert state_o.shape == (B, L, D_STATE), state_o.shape

    assert jnp.allclose(msa_o, msa_r, atol=1e-4, rtol=1e-4), "msa mismatch"
    assert jnp.allclose(state_o, state_r, atol=1e-5, rtol=1e-5), "state mismatch"
    # Default pair path uses a bf16 pos/chain table on the MXU: the 0/1 one-hot
    # is exact; only the table values round (~1e-3 abs for these magnitudes).
    assert jnp.allclose(pair_o, pair_r, atol=1e-2, rtol=1e-2), "pair (bf16) mismatch"

    # Strict-f32 path with explicit i-row tiling (grid (B, 2, 1)) proves exact
    # semantics and exercises the multi-tile ceil-div path.
    pair_f32 = jax.block_until_ready(jax.jit(
        lambda s, i, c, e, p: pair_embedding(
            s, i, c, e, p["emb_left"], p["emb_left_epi"], p["emb_right"],
            p["emb_right_epi"], p["pos_emb"], p["chain_emb"],
            ti=8, compute_dtype=jnp.float32))(seq, idx, chain_idx, epi_info, params))
    assert jnp.allclose(pair_f32, pair_r, atol=1e-4, rtol=1e-4), "pair (f32) mismatch"

    print("KERNEL_OK")
</pallas_src>

<mosaic_0001>
module attributes {stable_mosaic.version = 11 : i64} {
  func.func @_pair_kernel(%arg0: i32, %arg1: i32, %arg2: i32, %arg3: memref<1x16x1xi32, #tpu.memory_space<vmem>>, %arg4: memref<1x1x16xi32, #tpu.memory_space<vmem>>, %arg5: memref<1x16x1xi32, #tpu.memory_space<vmem>>, %arg6: memref<1x1x16xi32, #tpu.memory_space<vmem>>, %arg7: memref<1x16x1xi32, #tpu.memory_space<vmem>>, %arg8: memref<1x16x1xi32, #tpu.memory_space<vmem>>, %arg9: memref<1x16x1xi32, #tpu.memory_space<vmem>>, %arg10: memref<1x16x1xi32, #tpu.memory_space<vmem>>, %arg11: memref<128x128xbf16, #tpu.memory_space<vmem>>, %arg12: memref<24x128xf32, #tpu.memory_space<vmem>>, %arg13: memref<24x128xf32, #tpu.memory_space<vmem>>, %arg14: memref<1x16x16x128xf32, #tpu.memory_space<vmem>>) attributes {dimension_semantics = [#tpu.dimension_semantics<parallel>, #tpu.dimension_semantics<parallel>, #tpu.dimension_semantics<parallel>], iteration_bounds = array<i64: 2, 1, 1>, scalar_prefetch = 0 : i64, scratch_operands = 0 : i64, tpu.core_type = #tpu.core_type<tc>, window_params = [{transform_indices = @transform_0, window_bounds = array<i64: 1, 16, 1>}, {transform_indices = @transform_1, window_bounds = array<i64: 1, 1, 16>}, {transform_indices = @transform_2, window_bounds = array<i64: 1, 16, 1>}, {transform_indices = @transform_3, window_bounds = array<i64: 1, 1, 16>}, {transform_indices = @transform_4, window_bounds = array<i64: 1, 16, 1>}, {transform_indices = @transform_5, window_bounds = array<i64: 1, 16, 1>}, {transform_indices = @transform_6, window_bounds = array<i64: 1, 16, 1>}, {transform_indices = @transform_7, window_bounds = array<i64: 1, 16, 1>}, {pipeline_mode = #tpu.pipeline_mode<synchronous>, transform_indices = @transform_8, window_bounds = array<i64: 128, 128>}, {pipeline_mode = #tpu.pipeline_mode<synchronous>, transform_indices = @transform_9, window_bounds = array<i64: 24, 128>}, {pipeline_mode = #tpu.pipeline_mode<synchronous>, transform_indices = @transform_10, window_bounds = array<i64: 24, 128>}, {transform_indices = @transform_11, window_bounds = array<i64: 1, 16, 16, 128>}]} {
    %c0 = arith.constant 0 : index
    %c0_0 = arith.constant 0 : index
    %c0_1 = arith.constant 0 : index
    %0 = vector.load %arg3[%c0, %c0_0, %c0_1] : memref<1x16x1xi32, #tpu.memory_space<vmem>>, vector<1x16x1xi32>
    %1 = vector.shape_cast %0 : vector<1x16x1xi32> to vector<16x1xi32>
    %c0_2 = arith.constant 0 : index
    %c0_3 = arith.constant 0 : index
    %c0_4 = arith.constant 0 : index
    %2 = vector.load %arg4[%c0_2, %c0_3, %c0_4] : memref<1x1x16xi32, #tpu.memory_space<vmem>>, vector<1x1x16xi32>
    %3 = vector.shape_cast %2 : vector<1x1x16xi32> to vector<1x16xi32>
    %c0_5 = arith.constant 0 : index
    %c0_6 = arith.constant 0 : index
    %c0_7 = arith.constant 0 : index
    %4 = vector.load %arg5[%c0_5, %c0_6, %c0_7] : memref<1x16x1xi32, #tpu.memory_space<vmem>>, vector<1x16x1xi32>
    %5 = vector.shape_cast %4 : vector<1x16x1xi32> to vector<16x1xi32>
    %c0_8 = arith.constant 0 : index
    %c0_9 = arith.constant 0 : index
    %c0_10 = arith.constant 0 : index
    %6 = vector.load %arg6[%c0_8, %c0_9, %c0_10] : memref<1x1x16xi32, #tpu.memory_space<vmem>>, vector<1x1x16xi32>
    %7 = vector.shape_cast %6 : vector<1x1x16xi32> to vector<1x16xi32>
    %8 = vector.broadcast %3 : vector<1x16xi32> to vector<16x16xi32>
    %9 = vector.broadcast %1 : vector<16x1xi32> to vector<16x16xi32>
    %10 = arith.subi %8, %9 : vector<16x16xi32>
    %c0_i32 = arith.constant 0 : i32
    %c64_i32 = arith.constant 64 : i32
    %11 = vector.broadcast %c0_i32 : i32 to vector<16x16xi32>
    %12 = arith.maxsi %11, %10 : vector<16x16xi32>
    %13 = vector.broadcast %c64_i32 : i32 to vector<16x16xi32>
    %14 = arith.minsi %13, %12 : vector<16x16xi32>
    %15 = vector.broadcast %7 : vector<1x16xi32> to vector<16x16xi32>
    %16 = vector.broadcast %5 : vector<16x1xi32> to vector<16x16xi32>
    %17 = arith.subi %15, %16 : vector<16x16xi32>
    %c65_i32 = arith.constant 65 : i32
    %c69_i32 = arith.constant 69 : i32
    %18 = vector.broadcast %c65_i32 : i32 to vector<16x16xi32>
    %19 = arith.maxsi %18, %17 : vector<16x16xi32>
    %20 = vector.broadcast %c69_i32 : i32 to vector<16x16xi32>
    %21 = arith.minsi %20, %19 : vector<16x16xi32>
    %22 = tpu.iota {dimensions = array<i32: 2>} : vector<16x16x128xi32>
    %23 = vector.shape_cast %14 : vector<16x16xi32> to vector<16x16x1xi32>
    %24 = vector.broadcast %23 : vector<16x16x1xi32> to vector<16x16x128xi32>
    %25 = arith.cmpi eq, %22, %24 : vector<16x16x128xi32>
    %26 = vector.shape_cast %21 : vector<16x16xi32> to vector<16x16x1xi32>
    %27 = vector.broadcast %26 : vector<16x16x1xi32> to vector<16x16x128xi32>
    %28 = arith.cmpi eq, %22, %27 : vector<16x16x128xi32>
    %29 = arith.ori %25, %28 : vector<16x16x128xi1>
    %30 = arith.extui %29 : vector<16x16x128xi1> to vector<16x16x128xi32>
    %31 = arith.sitofp %30 : vector<16x16x128xi32> to vector<16x16x128xf32>
    %32 = arith.truncf %31 : vector<16x16x128xf32> to vector<16x16x128xbf16>
    %33 = vector.shape_cast %32 : vector<16x16x128xbf16> to vector<256x128xbf16>
    %c0_11 = arith.constant 0 : index
    %c0_12 = arith.constant 0 : index
    %34 = vector.load %arg11[%c0_11, %c0_12] : memref<128x128xbf16, #tpu.memory_space<vmem>>, vector<128x128xbf16>
    %cst = arith.constant dense<0.000000e+00> : vector<256x128xf32>
    %35 = tpu.matmul %33, %34, %cst {dimension_numbers = #tpu.dot_dimension_numbers<[1], [0], [0], [1], [0, 0, 1, 1], [], []>} : vector<256x128xbf16>, vector<128x128xbf16>, vector<256x128xf32> -> vector<256x128xf32>
    %36 = vector.shape_cast %35 : vector<256x128xf32> to vector<16x16x128xf32>
    %37 = tpu.iota {dimensions = array<i32: 1>} : vector<16x24xi32>
    %c0_13 = arith.constant 0 : index
    %c0_14 = arith.constant 0 : index
    %c0_15 = arith.constant 0 : index
    %38 = vector.load %arg8[%c0_13, %c0_14, %c0_15] : memref<1x16x1xi32, #tpu.memory_space<vmem>>, vector<1x16x1xi32>
    %39 = vector.shape_cast %38 : vector<1x16x1xi32> to vector<16x1xi32>
    %40 = vector.broadcast %39 : vector<16x1xi32> to vector<16x24xi32>
    %41 = arith.cmpi eq, %37, %40 : vector<16x24xi32>
    %c0_16 = arith.constant 0 : index
    %c0_17 = arith.constant 0 : index
    %c0_18 = arith.constant 0 : index
    %42 = vector.load %arg10[%c0_16, %c0_17, %c0_18] : memref<1x16x1xi32, #tpu.memory_space<vmem>>, vector<1x16x1xi32>
    %43 = vector.shape_cast %42 : vector<1x16x1xi32> to vector<16x1xi32>
    %44 = vector.broadcast %43 : vector<16x1xi32> to vector<16x24xi32>
    %45 = arith.cmpi eq, %37, %44 : vector<16x24xi32>
    %46 = arith.ori %41, %45 : vector<16x24xi1>
    %47 = arith.extui %46 : vector<16x24xi1> to vector<16x24xi32>
    %48 = arith.sitofp %47 : vector<16x24xi32> to vector<16x24xf32>
    %c0_19 = arith.constant 0 : index
    %c0_20 = arith.constant 0 : index
    %49 = vector.load %arg12[%c0_19, %c0_20] : memref<24x128xf32, #tpu.memory_space<vmem>>, vector<24x128xf32>
    %cst_21 = arith.constant dense<0.000000e+00> : vector<16x128xf32>
    %50 = tpu.matmul %48, %49, %cst_21 {dimension_numbers = #tpu.dot_dimension_numbers<[1], [0], [0], [1], [0, 0, 1, 1], [], []>} : vector<16x24xf32>, vector<24x128xf32>, vector<16x128xf32> -> vector<16x128xf32>
    %51 = tpu.iota {dimensions = array<i32: 1>} : vector<16x24xi32>
    %c0_22 = arith.constant 0 : index
    %c0_23 = arith.constant 0 : index
    %c0_24 = arith.constant 0 : index
    %52 = vector.load %arg7[%c0_22, %c0_23, %c0_24] : memref<1x16x1xi32, #tpu.memory_space<vmem>>, vector<1x16x1xi32>
    %53 = vector.shape_cast %52 : vector<1x16x1xi32> to vector<16x1xi32>
    %54 = vector.broadcast %53 : vector<16x1xi32> to vector<16x24xi32>
    %55 = arith.cmpi eq, %51, %54 : vector<16x24xi32>
    %c0_25 = arith.constant 0 : index
    %c0_26 = arith.constant 0 : index
    %c0_27 = arith.constant 0 : index
    %56 = vector.load %arg9[%c0_25, %c0_26, %c0_27] : memref<1x16x1xi32, #tpu.memory_space<vmem>>, vector<1x16x1xi32>
    %57 = vector.shape_cast %56 : vector<1x16x1xi32> to vector<16x1xi32>
    %58 = vector.broadcast %57 : vector<16x1xi32> to vector<16x24xi32>
    %59 = arith.cmpi eq, %51, %58 : vector<16x24xi32>
    %60 = arith.ori %55, %59 : vector<16x24xi1>
    %61 = arith.extui %60 : vector<16x24xi1> to vector<16x24xi32>
    %62 = arith.sitofp %61 : vector<16x24xi32> to vector<16x24xf32>
    %c0_28 = arith.constant 0 : index
    %c0_29 = arith.constant 0 : index
    %63 = vector.load %arg13[%c0_28, %c0_29] : memref<24x128xf32, #tpu.memory_space<vmem>>, vector<24x128xf32>
    %cst_30 = arith.constant dense<0.000000e+00> : vector<16x128xf32>
    %64 = tpu.matmul %62, %63, %cst_30 {dimension_numbers = #tpu.dot_dimension_numbers<[1], [0], [0], [1], [0, 0, 1, 1], [], []>} : vector<16x24xf32>, vector<24x128xf32>, vector<16x128xf32> -> vector<16x128xf32>
    %65 = vector.shape_cast %50 : vector<16x128xf32> to vector<1x16x128xf32>
    %66 = vector.broadcast %65 : vector<1x16x128xf32> to vector<16x16x128xf32>
    %67 = arith.addf %36, %66 : vector<16x16x128xf32>
    %68 = vector.shape_cast %64 : vector<16x128xf32> to vector<16x1x128xf32>
    %69 = vector.broadcast %68 : vector<16x1x128xf32> to vector<16x16x128xf32>
    %70 = arith.addf %67, %69 : vector<16x16x128xf32>
    %71 = vector.shape_cast %70 : vector<16x16x128xf32> to vector<1x16x16x128xf32>
    %c0_31 = arith.constant 0 : index
    %c0_32 = arith.constant 0 : index
    %c0_33 = arith.constant 0 : index
    %c0_34 = arith.constant 0 : index
    %72 = vector.load %arg14[%c0_31, %c0_32, %c0_33, %c0_34] : memref<1x16x16x128xf32, #tpu.memory_space<vmem>>, vector<1x16x16x128xf32>
    tpu.vector_store %arg14[%c0_31, %c0_32, %c0_33, %c0_34], %71 {strides = array<i32>} : memref<1x16x16x128xf32, #tpu.memory_space<vmem>>, vector<1x16x16x128xf32>,
    return
  }
  func.func @transform_0(%arg0: i32, %arg1: i32, %arg2: i32) -> (i32, i32, i32) {
    %c0_i32 = arith.constant 0 : i32
    %c0_i32_0 = arith.constant 0 : i32
    return %arg0, %arg1, %c0_i32 : i32, i32, i32
  }
  func.func @transform_1(%arg0: i32, %arg1: i32, %arg2: i32) -> (i32, i32, i32) {
    %c0_i32 = arith.constant 0 : i32
    %c0_i32_0 = arith.constant 0 : i32
    return %arg0, %c0_i32, %arg2 : i32, i32, i32
  }
  func.func @transform_2(%arg0: i32, %arg1: i32, %arg2: i32) -> (i32, i32, i32) {
    %c0_i32 = arith.constant 0 : i32
    %c0_i32_0 = arith.constant 0 : i32
    return %arg0, %arg1, %c0_i32 : i32, i32, i32
  }
  func.func @transform_3(%arg0: i32, %arg1: i32, %arg2: i32) -> (i32, i32, i32) {
    %c0_i32 = arith.constant 0 : i32
    %c0_i32_0 = arith.constant 0 : i32
    return %arg0, %c0_i32, %arg2 : i32, i32, i32
  }
  func.func @transform_4(%arg0: i32, %arg1: i32, %arg2: i32) -> (i32, i32, i32) {
    %c0_i32 = arith.constant 0 : i32
    %c0_i32_0 = arith.constant 0 : i32
    return %arg0, %arg1, %c0_i32 : i32, i32, i32
  }
  func.func @transform_5(%arg0: i32, %arg1: i32, %arg2: i32) -> (i32, i32, i32) {
    %c0_i32 = arith.constant 0 : i32
    %c0_i32_0 = arith.constant 0 : i32
    return %arg0, %arg2, %c0_i32 : i32, i32, i32
  }
  func.func @transform_6(%arg0: i32, %arg1: i32, %arg2: i32) -> (i32, i32, i32) {
    %c0_i32 = arith.constant 0 : i32
    %c0_i32_0 = arith.constant 0 : i32
    return %arg0, %arg1, %c0_i32 : i32, i32, i32
  }
  func.func @transform_7(%arg0: i32, %arg1: i32, %arg2: i32) -> (i32, i32, i32) {
    %c0_i32 = arith.constant 0 : i32
    %c0_i32_0 = arith.constant 0 : i32
    return %arg0, %arg2, %c0_i32 : i32, i32, i32
  }
  func.func @transform_8(%arg0: i32, %arg1: i32, %arg2: i32) -> (i32, i32) {
    %c0_i32 = arith.constant 0 : i32
    %c0_i32_0 = arith.constant 0 : i32
    %c0_i32_1 = arith.constant 0 : i32
    return %c0_i32, %c0_i32_0 : i32, i32
  }
  func.func @transform_9(%arg0: i32, %arg1: i32, %arg2: i32) -> (i32, i32) {
    %c0_i32 = arith.constant 0 : i32
    %c0_i32_0 = arith.constant 0 : i32
    %c0_i32_1 = arith.constant 0 : i32
    return %c0_i32, %c0_i32_0 : i32, i32
  }
  func.func @transform_10(%arg0: i32, %arg1: i32, %arg2: i32) -> (i32, i32) {
    %c0_i32 = arith.constant 0 : i32
    %c0_i32_0 = arith.constant 0 : i32
    %c0_i32_1 = arith.constant 0 : i32
    return %c0_i32, %c0_i32_0 : i32, i32
  }
  func.func @transform_11(%arg0: i32, %arg1: i32, %arg2: i32) -> (i32, i32, i32, i32) {
    %c0_i32 = arith.constant 0 : i32
    %c0_i32_0 = arith.constant 0 : i32
    return %arg0, %arg1, %arg2, %c0_i32 : i32, i32, i32, i32
  }
}

module attributes {stable_mosaic.version = 11 : i64} {
  func.func @_msa_kernel(%arg0: i32, %arg1: i32, %arg2: memref<1x4x16x48xf32, #tpu.memory_space<vmem>>, %arg3: memref<1x16x1xi32, #tpu.memory_space<vmem>>, %arg4: memref<48x256xf32, #tpu.memory_space<vmem>>, %arg5: memref<22x256xf32, #tpu.memory_space<vmem>>, %arg6: memref<1x4x16x256xf32, #tpu.memory_space<vmem>>) attributes {dimension_semantics = [#tpu.dimension_semantics<parallel>, #tpu.dimension_semantics<parallel>], iteration_bounds = array<i64: 2, 1>, scalar_prefetch = 0 : i64, scratch_operands = 0 : i64, tpu.core_type = #tpu.core_type<tc>, window_params = [{transform_indices = @transform_0, window_bounds = array<i64: 1, 4, 16, 48>}, {transform_indices = @transform_1, window_bounds = array<i64: 1, 16, 1>}, {pipeline_mode = #tpu.pipeline_mode<synchronous>, transform_indices = @transform_2, window_bounds = array<i64: 48, 256>}, {pipeline_mode = #tpu.pipeline_mode<synchronous>, transform_indices = @transform_3, window_bounds = array<i64: 22, 256>}, {transform_indices = @transform_4, window_bounds = array<i64: 1, 4, 16, 256>}]} {
    %c0 = arith.constant 0 : index
    %c0_0 = arith.constant 0 : index
    %c0_1 = arith.constant 0 : index
    %c0_2 = arith.constant 0 : index
    %0 = vector.load %arg2[%c0, %c0_0, %c0_1, %c0_2] : memref<1x4x16x48xf32, #tpu.memory_space<vmem>>, vector<1x4x16x48xf32>
    %1 = vector.shape_cast %0 : vector<1x4x16x48xf32> to vector<4x16x48xf32>
    %2 = vector.shape_cast %1 : vector<4x16x48xf32> to vector<64x48xf32>
    %c0_3 = arith.constant 0 : index
    %c0_4 = arith.constant 0 : index
    %3 = vector.load %arg4[%c0_3, %c0_4] : memref<48x256xf32, #tpu.memory_space<vmem>>, vector<48x256xf32>
    %cst = arith.constant dense<0.000000e+00> : vector<64x256xf32>
    %4 = tpu.matmul %2, %3, %cst {dimension_numbers = #tpu.dot_dimension_numbers<[1], [0], [0], [1], [0, 0, 1, 1], [], []>} : vector<64x48xf32>, vector<48x256xf32>, vector<64x256xf32> -> vector<64x256xf32>
    %5 = tpu.iota {dimensions = array<i32: 1>} : vector<16x22xi32>
    %c0_5 = arith.constant 0 : index
    %c0_6 = arith.constant 0 : index
    %c0_7 = arith.constant 0 : index
    %6 = vector.load %arg3[%c0_5, %c0_6, %c0_7] : memref<1x16x1xi32, #tpu.memory_space<vmem>>, vector<1x16x1xi32>
    %7 = vector.shape_cast %6 : vector<1x16x1xi32> to vector<16x1xi32>
    %8 = vector.broadcast %7 : vector<16x1xi32> to vector<16x22xi32>
    %9 = arith.cmpi eq, %5, %8 : vector<16x22xi32>
    %10 = arith.extui %9 : vector<16x22xi1> to vector<16x22xi32>
    %11 = arith.sitofp %10 : vector<16x22xi32> to vector<16x22xf32>
    %c0_8 = arith.constant 0 : index
    %c0_9 = arith.constant 0 : index
    %12 = vector.load %arg5[%c0_8, %c0_9] : memref<22x256xf32, #tpu.memory_space<vmem>>, vector<22x256xf32>
    %cst_10 = arith.constant dense<0.000000e+00> : vector<16x256xf32>
    %13 = tpu.matmul %11, %12, %cst_10 {dimension_numbers = #tpu.dot_dimension_numbers<[1], [0], [0], [1], [0, 0, 1, 1], [], []>} : vector<16x22xf32>, vector<22x256xf32>, vector<16x256xf32> -> vector<16x256xf32>
    %14 = vector.shape_cast %4 : vector<64x256xf32> to vector<4x16x256xf32>
    %15 = vector.shape_cast %13 : vector<16x256xf32> to vector<1x16x256xf32>
    %16 = vector.broadcast %15 : vector<1x16x256xf32> to vector<4x16x256xf32>
    %17 = arith.addf %14, %16 : vector<4x16x256xf32>
    %18 = vector.shape_cast %17 : vector<4x16x256xf32> to vector<1x4x16x256xf32>
    %c0_11 = arith.constant 0 : index
    %c0_12 = arith.constant 0 : index
    %c0_13 = arith.constant 0 : index
    %c0_14 = arith.constant 0 : index
    %19 = vector.load %arg6[%c0_11, %c0_12, %c0_13, %c0_14] : memref<1x4x16x256xf32, #tpu.memory_space<vmem>>, vector<1x4x16x256xf32>
    tpu.vector_store %arg6[%c0_11, %c0_12, %c0_13, %c0_14], %18 {strides = array<i32>} : memref<1x4x16x256xf32, #tpu.memory_space<vmem>>, vector<1x4x16x256xf32>,
    return
  }
  func.func @transform_0(%arg0: i32, %arg1: i32) -> (i32, i32, i32, i32) {
    %c0_i32 = arith.constant 0 : i32
    %c0_i32_0 = arith.constant 0 : i32
    %c0_i32_1 = arith.constant 0 : i32
    return %arg0, %arg1, %c0_i32, %c0_i32_0 : i32, i32, i32, i32
  }
  func.func @transform_1(%arg0: i32, %arg1: i32) -> (i32, i32, i32) {
    %c0_i32 = arith.constant 0 : i32
    %c0_i32_0 = arith.constant 0 : i32
    %c0_i32_1 = arith.constant 0 : i32
    return %arg0, %c0_i32, %c0_i32_0 : i32, i32, i32
  }
  func.func @transform_2(%arg0: i32, %arg1: i32) -> (i32, i32) {
    %c0_i32 = arith.constant 0 : i32
    %c0_i32_0 = arith.constant 0 : i32
    %c0_i32_1 = arith.constant 0 : i32
    return %c0_i32, %c0_i32_0 : i32, i32
  }
  func.func @transform_3(%arg0: i32, %arg1: i32) -> (i32, i32) {
    %c0_i32 = arith.constant 0 : i32
    %c0_i32_0 = arith.constant 0 : i32
    %c0_i32_1 = arith.constant 0 : i32
    return %c0_i32, %c0_i32_0 : i32, i32
  }
  func.func @transform_4(%arg0: i32, %arg1: i32) -> (i32, i32, i32, i32) {
    %c0_i32 = arith.constant 0 : i32
    %c0_i32_0 = arith.constant 0 : i32
    %c0_i32_1 = arith.constant 0 : i32
    return %arg0, %arg1, %c0_i32, %c0_i32_0 : i32, i32, i32, i32
  }
}

</mosaic_0001>

<bundles_post_ra>
// kernel: msa_emb_forward.2
= control target key start
LH: loop header
LB: loop body
LE: loop exit
PB: predicated region body
PF: predicated region fallthrough
CT: control target
= control target key end

     0   :  { %9 = vsyncpa [#allocation3], 0  ;;  %s1100_s0 = inlined_call_operand.vmem [shape: f32[2,4,16,48], index: 0, kind: input, shape index: {}]   ;;  %s1101_s1 = inlined_call_operand.vmem [shape: s32[2,16,1], index: 1, kind: input, shape index: {}]   ;;  %s1102_s2 = inlined_call_operand.vmem [shape: f32[48,256], index: 2, kind: input, shape index: {}]   ;;  %s1103_s3 = inlined_call_operand.vmem [shape: f32[22,256], index: 3, kind: input, shape index: {}]   ;;  %s1104_s4 = inlined_call_operand.hbm [shape: f32[2,4,16,256], index: 4, kind: output, shape index: {}]  }
   0x1   :  { %11 = vsyncpa [#allocation3 + $0x1], 0  ;;  %s888_s15 = smov 0   ;;  %s890_s16 = smov 0  }
   0x2   :  { %s892_s17 = smov 0   ;;  %s894_s18 = smov 0  }
   0x3   :  { %s896_s19 = smov 0   ;;  %s898_s20 = smov 0  }
   0x4 LB: > { %s664_s21 = sadd.s32 4294967295, %s856_s20   ;;  %s665_s22 = sadd.s32 4294967294, %s856_s20   ;;  %s856_s20 = sphi %s898_s20, %s17_s20   ;;  %s852_s19 = sphi %s896_s19, %s1111_s19   ;;  %s848_s18 = sphi %s894_s18, %s1110_s18   ;;  %s844_s17 = sphi %s892_s17, %s1109_s17   ;;  %s840_s16 = sphi %s890_s16, %s1108_s16   ;;  %s836_s15 = sphi %s888_s15, %s1107_s15  }
   0x5   : > { %s29_s23 = sadd.s32 1, %s852_s19  ;;  %s134_s24 = sadd.s32 1, %s844_s17 }
   0x6   : > { %p31_p0 = scmp.ge.s32.totalorder %s29_s23, 2  ;;  %p144_p1 = scmp.ne.s32.totalorder %s844_s17, %s840_s16 }
   0x7   : > { %p145_p2 = scmp.eq.s32.totalorder %s664_s21, 1  ;;  %p150_p3 = scmp.ne.s32.totalorder %s840_s16, %s836_s15 }
   0x8   : > { %s1113_s23 = smov (%p31_p0, %s29_s23), 0  ;;  %p151_p5 = scmp.eq.s32.totalorder %s665_s22, 1 }
   0x9   : > { %p928_p4 = por %p145_p2, %p144_p1  ;;  %s129_s26 = ssub.s32 %s852_s19, %s1113_s23 }
   0xa   : > { %p668_p6 = scmp.ge.s32.totalorder %s856_s20, 1  ;;  %p132_p7 = scmp.eq.s32.totalorder %s129_s26, 0 }
   0xb   : > { %p935_p8 = por %p151_p5, %p150_p3  ;;  %p197_p9 = scmp.lt.s32.totalorder %s856_s20, 3 }
   0xc   : > { %s941_s28 = scalar_select %p132_p7, %s844_s17, %s134_s24  }
   0xd   : > { %p198_p10 = pnand %p668_p6, %p197_p9 }
   0xe   : > { %p234_p11 = scmp.lt.s32.totalorder (!%p198_p10), %s848_s18, 1  ;;  %v259_v0 = vld [vmem:[%s1102_s2 + $0x8] sm:$0xff] (!%p198_p10)  ;;  %v261_v1 = vld [vmem:[%s1102_s2 + $0x18] sm:$0xff] (!%p198_p10)  ;;  %v258_v2 = vld [vmem:[%s1102_s2] sm:$0xff] (!%p198_p10)  ;;  %v858_v3 = vmov (!%p198_p10), 0   ;;  %v859_v8 = vmov (!%p198_p10), 0.0   ;;  %v408_v38 = vlaneseq (!%p198_p10) }
   0xf   : > { %201 = sbr.rel (%p198_p10) target bundleno = 393 (0x189), region = 36  ;;  %777 = vset.pattern.permute.xlu0 (!%p198_p10), %v858_v3  ;;  %v696_v4 = vpack.c.bf16 (!%p198_p10), %v261_v1, %v259_v0  ;;  %v260_v5 = vld [vmem:[%s1102_s2 + $0x10] sm:$0xff] (!%p198_p10)  ;;  %v263_v6 = vld [vmem:[%s1102_s2 + $0x28] sm:$0xff] (!%p198_p10)  ;;  %v265_v7 = vld [vmem:[%s1102_s2 + $0x38] sm:$0xff] (!%p198_p10)  ;;  %359 = vmatprep.mubr.f32.mxu0 (!%p198_p10), %v859_v8  ;;  %vm270_vm0 = vcmask (!%p198_p10), 392192   ;;  %vm437_vm1 = vcmask (!%p198_p10), 1045504  }
  0x10   : > { %v698_v9 = vpack.c.bf16 (!%p198_p10), %v260_v5, %v258_v2  ;;  %v700_v10 = vpack.c.bf16 (!%p198_p10), %v265_v7, %v263_v6  ;;  %v262_v11 = vld [vmem:[%s1102_s2 + $0x20] sm:$0xff] (!%p198_p10)  ;;  %v264_v12 = vld [vmem:[%s1102_s2 + $0x30] sm:$0xff] (!%p198_p10)  ;;  %v267_v13 = vld [vmem:[%s1102_s2 + $0x48] sm:$0xff] (!%p198_p10)  ;;  %389 = vmatprep.mubr.f32.mxu1 (!%p198_p10), %v859_v8  ;;  %v409_v39 = vand.u32 (!%p198_p10), 127, %v408_v38  ;;  %vm430_vm2 = vcmask (!%p198_p10), 179200   ;;  %s695_s29 = sshll.u32 (!%p198_p10), %s848_s18, 11 }
  0x11   : > { %697 = vmatprep.subr.bf16.mxu0 (!%p198_p10), %v696_v4  ;;  %712 = vmatprep.subr.bf16.mxu1 (!%p198_p10), %v696_v4  ;;  %v269_v14 = vld [vmem:[%s1102_s2 + $0x58] sm:$0xff] (!%p198_p10)  ;;  %v702_v15 = vpack.c.bf16 (!%p198_p10), %v264_v12, %v262_v11  ;;  %v266_v17 = vld [vmem:[%s1102_s2 + $0x40] sm:$0xff] (!%p198_p10)  ;;  %v268_v18 = vld [vmem:[%s1102_s2 + $0x50] sm:$0xff] (!%p198_p10)  ;;  %s860_s9 = smov (!%p198_p10), [#allocation2]  }
  0x12   : > { %699 = vmatpush1.bf16.msra.mxu0 (!%p198_p10), %v698_v9  ;;  %715 = vmatpush1.bf16.msra.mxu1 (!%p198_p10), %v698_v9  ;;  %v704_v16 = vpack.c.bf16 (!%p198_p10), %v269_v14, %v267_v13  ;;  %v425_v20 = vld [vmem:[%s1103_s3 + $0x8] sm:$0xff] (!%p198_p10)  ;;  %v427_v21 = vld [vmem:[%s1103_s3 + $0x18] sm:$0xff] (!%p198_p10)  ;;  %v706_v23 = vpack.c.bf16 (!%p198_p10), %v268_v18, %v266_v17  ;;  %v424_v25 = vld [vmem:[%s1103_s3] sm:$0xff] (!%p198_p10)  ;;  %s782_s10 = sshll.u32 (!%p198_p10), %s860_s9, 4  ;;  %s783_s10 = int_to_ptr.vmem [resolvable:$false] %s782_s10 }
  0x13   : > { %701 = vmatprep.subr.bf16.mxu0 (!%p198_p10), %v700_v10  ;;  %713 = vmatprep.subr.bf16.mxu1 (!%p198_p10), %v700_v10  ;;  %v708_v24 = vpack.c.bf16 (!%p198_p10), %v427_v21, %v425_v20  ;;  %v426_v26 = vld [vmem:[%s1103_s3 + $0x10] sm:$0xff] (!%p198_p10)  ;;  %v429_v30 = vld [vmem:[%s1103_s3 + $0x28] sm:$0x3f] (!%p198_p10)  ;;  %v428_v33 = vld [vmem:[%s1103_s3 + $0x20] sm:$0x3f] (!%p198_p10) }
  0x14   : > { %v710_v29 = vpack.c.bf16 (!%p198_p10), %v426_v26, %v424_v25 }
  0x16   : > { %s964_s21 = scalar_select %p234_p11, %s848_s18, 1  ;;  %703 = vmatpush1.bf16.msra.mxu0 %v702_v15  ;;  %716 = vmatpush1.bf16.msra.mxu1 %v702_v15 }
  0x17   : > { %705 = vmatprep.subr.bf16.mxu0 %v704_v16  ;;  %714 = vmatprep.subr.bf16.mxu1 %v704_v16  ;;  %s1048_s18 = scalar_lea.hbm %s1104_s4, %s695_s29 }
  0x18   : > { %s694_s8 = sshll.u32 %s964_s21, 4  ;;  %s693_s24 = sshll.u32 %s964_s21, 6 }
  0x19   : > { %s248_s11 = scalar_lea.vmem %s1101_s1, %s694_s8  ;;  %s999_s8 = scalar_lea.vmem %s1100_s0, %s693_s24 }
  0x1a   : > { %v410_v19 = vld [vmem:[%s248_s11] sm:$0xff]  ;;  %v411_v22 = vld [vmem:[%s248_s11 + $0x8] sm:$0xff]  ;;  %707 = vmatpush1.bf16.msra.mxu0 %v706_v23  ;;  %717 = vmatpush1.bf16.msra.mxu1 %v706_v23  ;;  %v256_v32 = vld [vmem:[%s999_s8 + $0x30] sm:$0xff]  ;;  %s230_s24 = sand.u32 1, %s840_s16   ;;  %s784_s11 = scalar_lea.vmem %s783_s10, 4096 }
  0x1b   : > { %413 = vperm.xlu0 %777, %v410_v19   ;;  %v250_v27 = vld [vmem:[%s999_s8] sm:$0xff]  ;;  %v255_v28 = vld [vmem:[%s999_s8 + $0x28] sm:$0xff]  ;;  %709 = vmatprep.subr.bf16.mxu1 %v708_v24  ;;  %v252_v34 = vld [vmem:[%s999_s8 + $0x10] sm:$0xff]  ;;  %s669_s26 = sshll.u32 %s230_s24, 7 }
  0x1c   : > { %v251_v31 = vld [vmem:[%s999_s8 + $0x8] sm:$0xff]  ;;  %v257_v35 = vld [vmem:[%s999_s8 + $0x38] sm:$0xff]  ;;  %v254_v37 = vld [vmem:[%s999_s8 + $0x20] sm:$0xff]  ;;  %s232_s30 = scalar_lea.vmem [#allocation2], %s669_s26 }
  0x1d   : > { %674 = vmatmul.mubr.msk.f32.vlgmr.msra.gmra.mrb[0].mxu0 %vm270_vm0, %v250_v27  ;;  %679 = vmatmul.mubr.msk.f32.vlgmr.msra.gmra.mrb[0].mxu1 %vm270_vm0, %v255_v28  ;;  %v253_v36 = vld [vmem:[%s999_s8 + $0x18] sm:$0xff]  ;;  %s570_s5 = sshll.u32 %s232_s30, 4  ;;  %s1054_s8 = scalar_lea.sflag [#allocation3], %s230_s24  ;;  %s1050_s5 = int_to_ptr.vmem [resolvable:$true] %s570_s5 }
  0x1e   : > { %365 = vmatprep.mubr.f32.mxu0 %v859_v8  ;;  %711 = vmatpush1.bf16.msra.mxu1 %v710_v29  ;;  %s778_s21 = scalar_lea.vmem %s1050_s5, 2048  ;;  %p785_p1 = scmp.lt.s32.totalorder %s1050_s5, %s783_s10 }
  0x1f   : > { %416 = vperm.xlu0 %777, %v411_v22   ;;  %395 = vmatprep.mubr.f32.mxu1 %v859_v8  ;;  %p779_p12 = scmp.ne.s32.totalorder %s1050_s5, %s778_s21  ;;  %p786_p2 = scmp.lt.s32.totalorder %s784_s11, %s778_s21 }
  0x20   : > { %684 = vmatprep.subr.msk.mxu1 %vm437_vm1, %v429_v30 }
  0x21   : > { %675 = vmatmul.mubr.msk.f32.gmra.mrb[2].mxu0 %vm270_vm0, %v251_v31  ;;  %680 = vmatmul.mubr.msk.f32.gmra.mrb[2].mxu1 %vm270_vm0, %v256_v32  ;;  %p780_p13 = pnand %p779_p12, %p928_p4  ;;  %p787_p3 = por %p786_p2, %p785_p1 }
  0x22   : > { %371 = vmatprep.mubr.f32.mxu0 %v859_v8  ;;  %401 = vmatprep.mubr.f32.mxu1 %v859_v8 }
  0x23   : > { %685 = vmatpush1.msk.msra.mxu1 %vm437_vm1, %v428_v33  ;;  %p781_p0 = pneg %p780_p13 }
  0x25   : > { %676 = vmatmul.mubr.msk.f32.gmra.mrb[4].mxu0 %vm270_vm0, %v252_v34  ;;  %681 = vmatmul.mubr.msk.f32.gmra.mrb[4].mxu1 %vm270_vm0, %v257_v35  ;;  %p788_p5 = pnand %p787_p3, %p781_p0 }
  0x26   : > { %377 = vmatprep.mubr.f32.mxu0 %v859_v8  ;;  %508 = vmatprep.mubr.f32.mxu1 %v859_v8 }
  0x29   : > { %677 = vmatmul.mubr.msk.f32.gmra.mrb[6].mxu0 %vm270_vm0, %v253_v36 }
  0x2a   : > { %383 = vmatprep.mubr.f32.mxu0 %v859_v8 }
  0x2d   : > { %678 = vmatmul.mubr.msk.f32.gmra.mrb[8].mxu0 %vm270_vm0, %v254_v37 }
  0x9a   : > { %v414_v40 = vpop.permute.xlu0 %413 }
  0x9b   : > { %vm418_vm3 = vcmp.eq.s32.totalorder %v409_v39, %v414_v40 }
  0x9c   : > { %v682_v41 = vsel %vm418_vm3, 1.0, %v859_v8 }
  0x9d   : > { %686 = vmatmul.mubr.msk.f32.vlgmr.msra.gmra.mrb[6].mxu1 %vm430_vm2, %v682_v41 }
  0x9e   : > { %v417_v42 = vpop.permute.xlu0 %416  ;;  %514 = vmatprep.mubr.f32.mxu1 %v859_v8 }
  0x9f   : > { %vm419_vm4 = vcmp.eq.s32.totalorder %v409_v39, %v417_v42 }
  0xa0   : > { %v683_v43 = vsel %vm419_vm4, 1.0, %v859_v8 }
  0xa1   : > { %687 = vmatmul.mubr.msk.f32.gmra.mrb[8].mxu1 %vm430_vm2, %v683_v43 }
  0xf0   : > { %v361_v44 = vpop.f32.mrb[0].mxu0  ;;  %v391_v45 = vpop.f32.mrb[0].mxu1 }
  0xf1   : > { %v363_v46 = vpop.f32.mrb[1].mxu0  ;;  %v393_v47 = vpop.f32.mrb[1].mxu1 }
  0xf4   : > { %v367_v48 = vpop.f32.mrb[2].mxu0  ;;  %v397_v49 = vpop.f32.mrb[2].mxu1 }
  0xf5   : > { %v369_v50 = vpop.f32.mrb[3].mxu0  ;;  %v399_v51 = vpop.f32.mrb[3].mxu1 }
  0xf8   : > { %v373_v52 = vpop.f32.mrb[4].mxu0  ;;  %v403_v53 = vpop.f32.mrb[4].mxu1 }
  0xf9   : > { %v375_v54 = vpop.f32.mrb[5].mxu0  ;;  %v405_v55 = vpop.f32.mrb[5].mxu1 }
  0xfc   : > { %v379_v56 = vpop.f32.mrb[6].mxu0 }
  0xfd   : > { %v381_v57 = vpop.f32.mrb[7].mxu0 }
 0x100   : > { %v385_v58 = vpop.f32.mrb[8].mxu0 }
 0x101   : > { %v387_v59 = vpop.f32.mrb[9].mxu0 }
 0x170   : > { %v510_v60 = vpop.f32.mrb[6].mxu1 }
 0x171   : > { %v521_v61 = vadd.f32 %v510_v60, %v361_v44  ;;  %v525_v62 = vadd.f32 %v510_v60, %v373_v52  ;;  %v529_v63 = vadd.f32 %v510_v60, %v385_v58  ;;  %v533_v0 = vadd.f32 %v510_v60, %v397_v49  ;;  %v512_v1 = vpop.f32.mrb[7].mxu1 }
 0x172   : > { %v522_v2 = vadd.f32 %v512_v1, %v363_v46  ;;  %v526_v3 = vadd.f32 %v512_v1, %v375_v54  ;;  %v530_v4 = vadd.f32 %v512_v1, %v387_v59  ;;  %v534_v5 = vadd.f32 %v512_v1, %v399_v51 }
 0x173   : > { %537 = vst [vmem:[%s232_s30] sm:$0xff] %v521_v61  ;;  %541 = vst [vmem:[%s232_s30 + $0x20] sm:$0xff] %v525_v62 }
 0x174   : > { %545 = vst [vmem:[%s232_s30 + $0x40] sm:$0xff] %v529_v63  ;;  %549 = vst [vmem:[%s232_s30 + $0x60] sm:$0xff] %v533_v0  ;;  %v516_v6 = vpop.f32.mrb[8].mxu1 }
 0x175   : > { %538 = vst [vmem:[%s232_s30 + $0x8] sm:$0xff] %v522_v2  ;;  %542 = vst [vmem:[%s232_s30 + $0x28] sm:$0xff] %v526_v3  ;;  %v523_v7 = vadd.f32 %v516_v6, %v367_v48  ;;  %v527_v8 = vadd.f32 %v516_v6, %v379_v56  ;;  %v531_v9 = vadd.f32 %v516_v6, %v391_v45  ;;  %v518_v11 = vpop.f32.mrb[9].mxu1 }
 0x176   : > { %546 = vst [vmem:[%s232_s30 + $0x48] sm:$0xff] %v530_v4  ;;  %550 = vst [vmem:[%s232_s30 + $0x68] sm:$0xff] %v534_v5  ;;  %v535_v10 = vadd.f32 %v516_v6, %v403_v53  ;;  %v524_v12 = vadd.f32 %v518_v11, %v369_v50  ;;  %v528_v13 = vadd.f32 %v518_v11, %v381_v57 }
 0x177   : > { %v532_v14 = vadd.f32 %v518_v11, %v393_v47  ;;  %v536_v15 = vadd.f32 %v518_v11, %v405_v55  ;;  %539 = vst [vmem:[%s232_s30 + $0x10] sm:$0xff] %v523_v7  ;;  %543 = vst [vmem:[%s232_s30 + $0x30] sm:$0xff] %v527_v8 }
 0x178   : > { %547 = vst [vmem:[%s232_s30 + $0x50] sm:$0xff] %v531_v9  ;;  %551 = vst [vmem:[%s232_s30 + $0x70] sm:$0xff] %v535_v10 }
 0x179   : > { %540 = vst [vmem:[%s232_s30 + $0x18] sm:$0xff] %v524_v12  ;;  %544 = vst [vmem:[%s232_s30 + $0x38] sm:$0xff] %v528_v13 }
 0x17a   : > { %548 = vst [vmem:[%s232_s30 + $0x58] sm:$0xff] %v532_v14  ;;  %552 = vst [vmem:[%s232_s30 + $0x78] sm:$0xff] %v536_v15 }
 0x17b   : > { %791 = shalt.err (!%p788_p5)
}
 0x17c   : > { %s792_s12 = scalar_lea.hbm %s1048_s18, 2048  ;;  %s796_s22 = scalar_lea.hbm %s1104_s4, 4096 }
 0x17d   : > { %p793_p6 = scmp.ne.s32.totalorder %s1048_s18, %s792_s12  ;;  %p797_p10 = scmp.lt.u32.totalorder %s1048_s18, %s1104_s4 }
 0x17e   : > { %p798_p11 = scmp.lt.u32.totalorder %s796_s22, %s792_s12  ;;  %p800_p13 = scmp.lt.u32.totalorder %s792_s12, %s1048_s18 }
 0x17f   : > { %p794_p7 = pnand %p793_p6, %p928_p4 }
 0x180   : > { %p799_p12 = por %p798_p11, %p797_p10 }
 0x181   : > { %p795_p9 = pneg %p794_p7 }
 0x182   : > { %p801_p0 = por %p800_p13, %p799_p12 }
 0x184   : > { %p802_p1 = pnand %p801_p0, %p795_p9 }
 0x186   : > { %805 = shalt.err (!%p802_p1)
}
 0x187   : > { %s861_s29 = smov 256   ;;  %s862_s30 = smov 16  }
 0x188   : > { %718 = dma.vmem_to_hbm [thread:$0]  (%p928_p4), %s1050_s5, 2048, %s1048_s18, %s1054_s8, %s861_s29, %s861_s29, %s862_s30  }
 0x189 PF: > { %p724_p2 = scmp.ge.s32.totalorder %s856_s20, 2  ;;  %s585_s6 = sand.u32 1, %s836_s15  }
 0x18a   : > { %s586_s7 = scalar_lea.sflag [#allocation3], %s585_s6 }
 0x18b   : > { %p721_p3 = pnand %p724_p2, %p935_p8 }
 0x18d   : > { %831 = dma.done.wait (!%p721_p3), %s586_s7, 2048  }
 0x18e   : > { %833 = vsyncadd (!%p721_p3), %s586_s7, 4294965248  ;;  %s17_s20 = sadd.s32 1, %s856_s20   ;;  %s1107_s15 = smov %s840_s16 }
 0x18f   : > { %p14_p5 = scmp.ge.s32.totalorder %s17_s20, 4   ;;  %s1108_s16 = smov %s844_s17 }
 0x190   : > { %s1109_s17 = smov %s941_s28  ;;  %s1110_s18 = smov %s852_s19 }
 0x191   : > { %s1111_s19 = smov %s1113_s23  ;;  %16 = sbr.rel (!%p14_p5) target bundleno = 4 (0x4), region = 74 }
 0x198   :  { %591 = vsyncpa [#allocation3], 1 }
 0x199   :  { %593 = vsyncpa [#allocation3 + $0x1], 1 }

// kernel: msa_emb_forward.3
= control target key start
LH: loop header
LB: loop body
LE: loop exit
PB: predicated region body
PF: predicated region fallthrough
CT: control target
= control target key end

     0   :  { %16 = vsyncpa [#allocation3], 0  ;;  %s3182_s0 = inlined_call_operand.vmem [shape: s32[2,16,1], index: 0, kind: input, shape index: {}]   ;;  %s3183_s1 = inlined_call_operand.vmem [shape: s32[2,1,16], index: 1, kind: input, shape index: {}]   ;;  %s3184_s2 = inlined_call_operand.vmem [shape: s32[2,16,1], index: 2, kind: input, shape index: {}]   ;;  %s3185_s3 = inlined_call_operand.vmem [shape: s32[2,1,16], index: 3, kind: input, shape index: {}]   ;;  %s3186_s4 = inlined_call_operand.vmem [shape: s32[2,16,1], index: 4, kind: input, shape index: {}, may-alias: {4,5}]   ;;  %s3187_s5 = inlined_call_operand.vmem [shape: s32[2,16,1], index: 5, kind: input, shape index: {}, may-alias: {4,5}]   ;;  %s3188_s6 = inlined_call_operand.vmem [shape: s32[2,16,1], index: 6, kind: input, shape index: {}, may-alias: {6,7}]   ;;  %s3189_s7 = inlined_call_operand.vmem [shape: s32[2,16,1], index: 7, kind: input, shape index: {}, may-alias: {6,7}]   ;;  %s3190_s8 = inlined_call_operand.vmem [shape: bf16[128,128], index: 8, kind: input, shape index: {}]   ;;  %s3191_s9 = inlined_call_operand.vmem [shape: f32[24,128], index: 9, kind: input, shape index: {}]   ;;  %s3192_s10 = inlined_call_operand.vmem [shape: f32[24,128], index: 10, kind: input, shape index: {}]   ;;  %s3193_s11 = inlined_call_operand.hbm [shape: f32[2,16,16,128], index: 11, kind: output, shape index: {}]  }
   0x1   :  { %18 = vsyncpa [#allocation3 + $0x1], 0  ;;  %s2626_s17 = smov 0   ;;  %s2628_s18 = smov 0  }
   0x2   :  { %s2630_s19 = smov 0   ;;  %s2632_s20 = smov 0  }
   0x3   :  { %s2634_s21 = smov 0   ;;  %s2636_s22 = smov 0  }
   0x4 LB: > { %3198 = sst [smem:[#allocation5_spill]] %s2545_s19  ;;  %s2172_s23 = sadd.s32 4294967295, %s2557_s22   ;;  %s2557_s22 = sphi %s2636_s22, %s24_s22   ;;  %s2553_s21 = sphi %s2634_s21, %s3216_s21   ;;  %s2549_s20 = sphi %s2632_s20, %s3215_s20   ;;  %s2545_s19 = sphi %s2630_s19, %s3214_s19   ;;  %s2541_s18 = sphi %s2628_s18, %s3218_s18   ;;  %s2537_s17 = sphi %s2626_s17, %s3217_s17  }
   0x5   : > { %3199 = sst [smem:[#allocation6_spill]] %s2553_s21  ;;  %s2173_s24 = sadd.s32 4294967294, %s2557_s22  }
   0x6   : > { %s43_s25 = sadd.s32 1, %s2553_s21  ;;  %s341_s26 = sadd.s32 1, %s2545_s19 }
   0x7   : > { %p45_p0 = scmp.ge.s32.totalorder %s43_s25, 2  ;;  %p351_p1 = scmp.ne.s32.totalorder %s2545_s19, %s2541_s18 }
   0x8   : > { %p352_p2 = scmp.eq.s32.totalorder %s2172_s23, 1  ;;  %p357_p3 = scmp.ne.s32.totalorder %s2541_s18, %s2537_s17 }
   0x9   : > { %s3220_s25 = smov (%p45_p0, %s43_s25), 0  ;;  %p358_p5 = scmp.eq.s32.totalorder %s2173_s24, 1 }
   0xa   : > { %3200 = sst [smem:[#allocation7_spill]] %s3220_s25  ;;  %p2666_p4 = por %p352_p2, %p351_p1 }
   0xb   : > { %s334_s28 = ssub.s32 %s2553_s21, %s3220_s25  ;;  %p2176_p6 = scmp.ge.s32.totalorder %s2557_s22, 1 }
   0xc   : > { %p339_p7 = scmp.eq.s32.totalorder %s334_s28, 0  ;;  %p2673_p8 = por %p358_p5, %p357_p3 }
   0xd   : > { %p481_p9 = scmp.lt.s32.totalorder %s2557_s22, 3 }
   0xe   : > { %s3202_s29 = scalar_select %p2673_p8, 1, 0 }
   0xf   : > { %s2679_s30 = scalar_select %p339_p7, %s2545_s19, %s341_s26  }
  0x10   : > { %3203 = sst [smem:[#allocation8_spill]] %s3202_s29  ;;  %p482_p10 = pnand %p2176_p6, %p481_p9 }
  0x11   : > { %3204 = sst [smem:[#allocation9_spill]] %s2679_s30  ;;  %p583_p11 = scmp.lt.s32.totalorder (!%p482_p10), %s2549_s20, 1  ;;  %v2559_v0 = vmov (!%p482_p10), 0   ;;  %v2471_v13 = vld [vmem:[%s3190_s8] sm:$0xff] (!%p482_p10)   ;;  %v2472_v14 = vld [vmem:[%s3190_s8 + $0x8] sm:$0xff] (!%p482_p10)   ;;  %v2473_v15 = vld [vmem:[%s3190_s8 + $0x10] sm:$0xff] (!%p482_p10)   ;;  %v703_v18 = vlaneseq (!%p482_p10) }
  0x12   : > { %485 = sbr.rel (%p482_p10) target bundleno = 643 (0x283), region = 64  ;;  %2470 = vset.pattern.permute.xlu1 (!%p482_p10), %v2559_v0  ;;  %2469 = vset.pattern.permute.xlu0 (!%p482_p10), %v2559_v0  ;;  %v2474_v16 = vld [vmem:[%s3190_s8 + $0x18] sm:$0xff] (!%p482_p10)   ;;  %v2475_v17 = vld [vmem:[%s3190_s8 + $0x20] sm:$0xff] (!%p482_p10)   ;;  %v2476_v19 = vld [vmem:[%s3190_s8 + $0x28] sm:$0xff] (!%p482_p10)   ;;  %v3209_v54 = vmov (!%p482_p10), 0 }
  0x13   : > { %2392 = vmatprep.subr.bf16.mxu1 (!%p482_p10), %v2471_v13  ;;  %2318 = vmatprep.subr.bf16.mxu0 (!%p482_p10), %v2471_v13  ;;  %v2730_v21 = vshrl.u32 (!%p482_p10), %v703_v18, 7  ;;  %v2477_v25 = vld [vmem:[%s3190_s8 + $0x30] sm:$0xff] (!%p482_p10)   ;;  %v2738_v32 = vand.u32 (!%p482_p10), 127, %v703_v18  ;;  %v2478_v33 = vld [vmem:[%s3190_s8 + $0x38] sm:$0xff] (!%p482_p10)  }
  0x14   : > { %2400 = vmatpush3.bf16.msra.mxu1 (!%p482_p10), %v2471_v13  ;;  %2319 = vmatpush3.bf16.msra.mxu0 (!%p482_p10), %v2471_v13 }
  0x15   : > { %2393 = vmatprep.subr.bf16.mxu1 (!%p482_p10), %v2472_v14  ;;  %2320 = vmatprep.subr.bf16.mxu0 (!%p482_p10), %v2472_v14  ;;  %v2736_v27 = vsub.s32 (!%p482_p10), 2, %v2730_v21  ;;  %v2758_v44 = vsub.s32 (!%p482_p10), 3, %v2730_v21  ;;  %v718_v50 = vsub.s32 (!%p482_p10), 1, %v2730_v21  ;;  %v2786_v59 = vsub.s32 (!%p482_p10), 0, %v2730_v21 }
  0x18   : > { %2401 = vmatpush3.bf16.msra.mxu1 (!%p482_p10), %v2472_v14  ;;  %2321 = vmatpush3.bf16.msra.mxu0 (!%p482_p10), %v2472_v14  ;;  %v784_v14 = vsub.s32 (!%p482_p10), 7, %v2730_v21 }
  0x19   : > { %s2683_s12 = scalar_select %p583_p11, %s2549_s20, 1  ;;  %2394 = vmatprep.subr.bf16.mxu1 %v2473_v15  ;;  %2322 = vmatprep.subr.bf16.mxu0 %v2473_v15 }
  0x1b   : > { %s2277_s13 = sshll.u32 %s2683_s12, 4 }
  0x1c   : > { %s590_s16 = scalar_lea.vmem %s3182_s0, %s2277_s13  ;;  %s606_s26 = scalar_lea.vmem %s3184_s2, %s2277_s13  ;;  %2402 = vmatpush3.bf16.msra.mxu1 %v2473_v15  ;;  %2323 = vmatpush3.bf16.msra.mxu0 %v2473_v15  ;;  %v1484_v15 = vld [vmem:[%s3191_s9] sm:$0xff] }
  0x1d   : > { %v658_v1 = vld [vmem:[%s590_s16 + $0x8] sm:$0xff]  ;;  %v657_v2 = vld [vmem:[%s590_s16] sm:$0xff]  ;;  %s632_s21 = scalar_lea.vmem %s3187_s5, %s2277_s13  ;;  %s652_s29 = scalar_lea.vmem %s3189_s7, %s2277_s13  ;;  %2395 = vmatprep.subr.bf16.mxu1 %v2474_v16  ;;  %2324 = vmatprep.subr.bf16.mxu0 %v2474_v16 }
  0x1e   : > { %671 = vperm.xlu0 %2469, %v658_v1   ;;  %668 = vperm.xlu1 %2470, %v657_v2   ;;  %v661_v3 = vld [vmem:[%s606_s26 + $0x8] sm:$0xff]  ;;  %v660_v4 = vld [vmem:[%s606_s26] sm:$0xff]  ;;  %s622_s16 = scalar_lea.vmem %s3186_s4, %s2277_s13  ;;  %s642_s25 = scalar_lea.vmem %s3188_s6, %s2277_s13  ;;  %v751_v1 = vsub.s32 4, %v2730_v21 }
  0x1f   : > { %v1458_v5 = vld [vmem:[%s632_s21] sm:$0xff]  ;;  %v1459_v7 = vld [vmem:[%s632_s21 + $0x8] sm:$0xff]  ;;  %s613_s13 = scalar_lea.vmem %s3185_s3, %s2683_s12 }
  0x20   : > { %v1468_v6 = vld [vmem:[%s652_s29] sm:$0xff]  ;;  %v1469_v8 = vld [vmem:[%s652_s29 + $0x8] sm:$0xff]  ;;  %2403 = vmatpush3.bf16.msra.mxu1 %v2474_v16  ;;  %2325 = vmatpush3.bf16.msra.mxu0 %v2474_v16  ;;  %s2563_s29 = smov [#allocation2]  }
  0x21   : > { %v1569_v9 = vld [vmem:[%s622_s16] sm:$0xff]  ;;  %v1570_v11 = vld [vmem:[%s622_s16 + $0x8] sm:$0xff]  ;;  %2396 = vmatprep.subr.bf16.mxu1 %v2475_v17  ;;  %2326 = vmatprep.subr.bf16.mxu0 %v2475_v17  ;;  %s2283_s16 = sshll.u32 %s2549_s20, 12  ;;  %s2483_s30 = sshll.u32 %s2563_s29, 4  ;;  %s2484_s30 = int_to_ptr.vmem [resolvable:$false] %s2483_s30 }
  0x22   : > { %691 = vperm.xlu0 %2469, %v661_v3   ;;  %688 = vperm.xlu1 %2470, %v660_v4   ;;  %v1579_v10 = vld [vmem:[%s642_s25] sm:$0xff]  ;;  %v1580_v12 = vld [vmem:[%s642_s25 + $0x8] sm:$0xff]  ;;  %s597_s25 = scalar_lea.vmem %s3183_s1, %s2683_s12  ;;  %v762_v4 = vsub.s32 5, %v2730_v21  ;;  %s579_s12 = sand.u32 1, %s2541_s18  }
  0x23   : > { %v2190_v20 = vld [vmem:[%s597_s25] ss:$0 sm:$0xff]  ;;  %v1485_v16 = vld [vmem:[%s3191_s9 + $0x8] sm:$0xff]  ;;  %s2177_s14 = sshll.u32 %s579_s12, 8  ;;  %s3127_s19 = scalar_lea.hbm %s3193_s11, %s2283_s16 }
  0x24   : > { %2404 = vmatpush3.bf16.msra.mxu1 %v2475_v17  ;;  %2327 = vmatpush3.bf16.msra.mxu0 %v2475_v17  ;;  %v2191_v26 = vld [vmem:[%s613_s13] ss:$0 sm:$0xff]  ;;  %v2820_v17 = vpack.c.bf16 %v1485_v16, %v1484_v15  ;;  %s3054_s15 = scalar_lea.vmem [#allocation2], %s2177_s14  ;;  %s3136_s20 = scalar_lea.sflag [#allocation3], %s579_s12 }
  0x25   : > { %2397 = vmatprep.subr.bf16.mxu1 %v2476_v19  ;;  %2328 = vmatprep.subr.bf16.mxu0 %v2476_v19  ;;  %s1974_s23 = sshll.u32 %s3054_s15, 4  ;;  %s2485_s13 = scalar_lea.vmem %s2484_s30, 8192  ;;  %s3129_s23 = int_to_ptr.vmem [resolvable:$true] %s1974_s23 }
  0x26   : > { %1461 = vperm.xlu0 %2469, %v1458_v5   ;;  %1471 = vperm.xlu1 %2470, %v1468_v6   ;;  %s2479_s21 = scalar_lea.vmem %s3129_s23, 4096  ;;  %p2486_p1 = scmp.lt.s32.totalorder %s3129_s23, %s2484_s30 }
  0x27   : > { %p2480_p12 = scmp.ne.s32.totalorder %s3129_s23, %s2479_s21  ;;  %p2487_p2 = scmp.lt.s32.totalorder %s2485_s13, %s2479_s21 }
  0x28   : > { %2405 = vmatpush3.bf16.msra.mxu1 %v2476_v19  ;;  %2329 = vmatpush3.bf16.msra.mxu0 %v2476_v19 }
  0x29   : > { %2398 = vmatprep.subr.bf16.mxu1 %v2477_v25  ;;  %2330 = vmatprep.subr.bf16.mxu0 %v2477_v25  ;;  %p2481_p13 = pnand %p2480_p12, %p2666_p4  ;;  %p2488_p3 = por %p2487_p2, %p2486_p1 }
  0x2a   : > { %1464 = vperm.xlu0 %2469, %v1459_v7   ;;  %1474 = vperm.xlu1 %2470, %v1469_v8  }
  0x2b   : > { %p2482_p0 = pneg %p2481_p13 }
  0x2c   : > { %2406 = vmatpush3.bf16.msra.mxu1 %v2477_v25  ;;  %2331 = vmatpush3.bf16.msra.mxu0 %v2477_v25 }
  0x2d   : > { %2399 = vmatprep.subr.bf16.mxu1 %v2478_v33  ;;  %2332 = vmatprep.subr.bf16.mxu0 %v2478_v33  ;;  %p2489_p5 = pnand %p2488_p3, %p2482_p0 }
  0x2e   : > { %1572 = vperm.xlu0 %2469, %v1569_v9   ;;  %1582 = vperm.xlu1 %2470, %v1579_v10  }
  0x30   : > { %2407 = vmatpush3.bf16.msra.mxu1 %v2478_v33  ;;  %2333 = vmatpush3.bf16.msra.mxu0 %v2478_v33 }
  0x31   : > { %2385 = vmatprep.subr.bf16.mxu1 %v2820_v17 }
  0x32   : > { %1575 = vperm.xlu0 %2469, %v1570_v11   ;;  %1585 = vperm.xlu1 %2470, %v1580_v12   ;;  %v773_v11 = vsub.s32 6, %v2730_v21 }
  0x9d   : > { %v672_v22 = vpop.permute.xlu0 %671  ;;  %v669_v23 = vpop.permute.xlu1 %668 }
  0x9e   : > { %v674_v24 = vsub.s32 %v2190_v20, %v672_v22  ;;  %v673_v35 = vsub.s32 %v2190_v20, %v669_v23 }
  0xa0   : > { %vm677_vm0 = vcmp.gt.s32.totalorder %v674_v24, 0  ;;  %vm675_vm7 = vcmp.gt.s32.totalorder %v673_v35, 0 }
  0xa1   : > { %v678_v28 = vsel %vm677_vm0, %v674_v24, 0  ;;  %v692_v29 = vpop.permute.xlu0 %691  ;;  %v689_v30 = vpop.permute.xlu1 %688  ;;  %v676_v47 = vsel %vm675_vm7, %v673_v35, 0 }
  0xa2   : > { %vm681_vm1 = vcmp.lt.s32.totalorder %v678_v28, 64  ;;  %v694_v31 = vsub.s32 %v2191_v26, %v692_v29  ;;  %v693_v42 = vsub.s32 %v2191_v26, %v689_v30  ;;  %vm679_vm12 = vcmp.lt.s32.totalorder %v676_v47, 64 }
  0xa3   : > { %v2743_v34 = vsel %vm681_vm1, %v678_v28, 64  ;;  %v2783_v58 = vsel %vm679_vm12, %v676_v47, 64  ;;  %v1595_v47 = vld [vmem:[%s3192_s10] sm:$0xff] }
  0xa4   : > { %vm697_vm2 = vcmp.gt.s32.totalorder %v694_v31, 65  ;;  %v818_v36 = vrot.slane %v2743_v34, %v2736_v27  ;;  %vm695_vm11 = vcmp.gt.s32.totalorder %v693_v42, 65  ;;  %v829_v49 = vrot.slane %v2743_v34, %v2758_v44 }
  0xa5   : > { %v698_v37 = vsel %vm697_vm2, %v694_v31, 65  ;;  %v1462_v38 = vpop.permute.xlu0 %1461  ;;  %v1472_v39 = vpop.permute.xlu1 %1471  ;;  %v696_v53 = vsel %vm695_vm11, %v693_v42, 65  ;;  %v2778_v56 = vrot.slane %v2743_v34, %v718_v50  ;;  %v708_v60 = vrot.slane %v2783_v58, %v2786_v59 }
  0xa6   : > { %vm701_vm3 = vcmp.lt.s32.totalorder %v698_v37, 69  ;;  %vm1466_vm4 = vcmp.eq.s32.totalorder %v2738_v32, %v1462_v38  ;;  %vm1476_vm5 = vcmp.eq.s32.totalorder %v2738_v32, %v1472_v39  ;;  %820 = vbcast.lane.b32.xlu0 %v818_v36, 256  ;;  %824 = vbcast.lane.b32.xlu1 %v818_v36, 264  ;;  %vm699_vm0 = vcmp.lt.s32.totalorder %v696_v53, 69 }
  0xa7   : > { %v2749_v40 = vsel %vm701_vm3, %v698_v37, 69  ;;  %vm2751_vm6 = vmor %vm1466_vm4, %vm1476_vm5  ;;  %v2790_v61 = vsel %vm699_vm0, %v696_v53, 69  ;;  %v719_v63 = vrot.slane %v2783_v58, %v718_v50  ;;  %v840_v2 = vrot.slane %v2743_v34, %v751_v1 }
  0xa8   : > { %v1026_v43 = vrot.slane %v2749_v40, %v2736_v27  ;;  %v1037_v55 = vrot.slane %v2749_v40, %v2758_v44  ;;  %v2781_v57 = vrot.slane %v2749_v40, %v718_v50  ;;  %v916_v62 = vrot.slane %v2790_v61, %v2786_v59 }
  0xa9   : > { %v1465_v45 = vpop.permute.xlu0 %1464  ;;  %v1475_v46 = vpop.permute.xlu1 %1474  ;;  %v927_v0 = vrot.slane %v2790_v61, %v718_v50  ;;  %v1048_v3 = vrot.slane %v2749_v40, %v751_v1  ;;  %v851_v5 = vrot.slane %v2743_v34, %v762_v4  ;;  %v1059_v6 = vrot.slane %v2749_v40, %v762_v4 }
  0xaa   : > { %vm1467_vm8 = vcmp.eq.s32.totalorder %v2738_v32, %v1465_v45  ;;  %vm1477_vm9 = vcmp.eq.s32.totalorder %v2738_v32, %v1475_v46  ;;  %1028 = vbcast.lane.b32.xlu0 %v1026_v43, 256  ;;  %1032 = vbcast.lane.b32.xlu1 %v1026_v43, 264  ;;  %v730_v7 = vrot.slane %v2783_v58, %v2736_v27 }
  0xab   : > { %vm2762_vm10 = vmor %vm1467_vm8, %vm1477_vm9  ;;  %v938_v8 = vrot.slane %v2790_v61, %v2736_v27  ;;  %v741_v9 = vrot.slane %v2783_v58, %v2758_v44  ;;  %v949_v10 = vrot.slane %v2790_v61, %v2758_v44  ;;  %v862_v12 = vrot.slane %v2743_v34, %v773_v11  ;;  %v1486_v44 = vld [vmem:[%s3191_s9 + $0x10] sm:$0xff] }
  0xac   : > { %v1070_v13 = vrot.slane %v2749_v40, %v773_v11  ;;  %v873_v18 = vrot.slane %v2743_v34, %v784_v14  ;;  %v1081_v19 = vrot.slane %v2749_v40, %v784_v14  ;;  %v752_v20 = vrot.slane %v2783_v58, %v751_v1 }
  0xad   : > { %v1573_v51 = vpop.permute.xlu0 %1572  ;;  %v1583_v52 = vpop.permute.xlu1 %1582  ;;  %v960_v22 = vrot.slane %v2790_v61, %v751_v1  ;;  %v763_v23 = vrot.slane %v2783_v58, %v762_v4  ;;  %v971_v24 = vrot.slane %v2790_v61, %v762_v4  ;;  %v774_v25 = vrot.slane %v2783_v58, %v773_v11 }
  0xae   : > { %vm1577_vm13 = vcmp.eq.s32.totalorder %v2738_v32, %v1573_v51  ;;  %vm1587_vm14 = vcmp.eq.s32.totalorder %v2738_v32, %v1583_v52  ;;  %831 = vbcast.lane.b32.xlu0 %v829_v49, 256  ;;  %835 = vbcast.lane.b32.xlu1 %v829_v49, 264  ;;  %v982_v26 = vrot.slane %v2790_v61, %v773_v11  ;;  %v1596_v49 = vld [vmem:[%s3192_s10 + $0x8] sm:$0xff] }
  0xaf   : > { %vm2771_vm15 = vmor %vm1577_vm13, %vm1587_vm14  ;;  %v785_v27 = vrot.slane %v2783_v58, %v784_v14  ;;  %v993_v28 = vrot.slane %v2790_v61, %v784_v14  ;;  %v796_v31 = vrot.slane %v2743_v34, %v2786_v59  ;;  %v1004_v36 = vrot.slane %v2749_v40, %v2786_v59 }
  0xb0   : > { %v3210_v54 = vsel %vm2771_vm15, 4294967295, %v3209_v54  ;;  %v2560_v40 = vmov 1.0|1.0   ;;  %v2865_v50 = vpack.c.bf16 %v1596_v49, %v1595_v47 }
  0xb1   : > { %v2833_v29 = vpop.permute.xlu0 %1575  ;;  %v2835_v30 = vpop.permute.xlu1 %1585 }
  0xb2   : > { %1039 = vbcast.lane.b32.xlu0 %v1037_v55, 256  ;;  %1043 = vbcast.lane.b32.xlu1 %v1037_v55, 264 }
  0xb6   : > { %714 = vbcast.lane.b32.xlu1 %v708_v60, 264  ;;  %710 = vbcast.lane.b32.xlu0 %v708_v60, 256 }
  0xba   : > { %922 = vbcast.lane.b32.xlu1 %v916_v62, 264  ;;  %918 = vbcast.lane.b32.xlu0 %v916_v62, 256 }
  0xbe   : > { %725 = vbcast.lane.b32.xlu1 %v719_v63, 264  ;;  %721 = vbcast.lane.b32.xlu0 %v719_v63, 256 }
  0xc2   : > { %933 = vbcast.lane.b32.xlu1 %v927_v0, 264  ;;  %929 = vbcast.lane.b32.xlu0 %v927_v0, 256 }
  0xc6   : > { %846 = vbcast.lane.b32.xlu1 %v840_v2, 264  ;;  %842 = vbcast.lane.b32.xlu0 %v840_v2, 256 }
  0xca   : > { %1054 = vbcast.lane.b32.xlu1 %v1048_v3, 264  ;;  %1050 = vbcast.lane.b32.xlu0 %v1048_v3, 256 }
  0xce   : > { %857 = vbcast.lane.b32.xlu1 %v851_v5, 264  ;;  %853 = vbcast.lane.b32.xlu0 %v851_v5, 256 }
  0xd2   : > { %1065 = vbcast.lane.b32.xlu1 %v1059_v6, 264  ;;  %1061 = vbcast.lane.b32.xlu0 %v1059_v6, 256 }
  0xd6   : > { %736 = vbcast.lane.b32.xlu1 %v730_v7, 264  ;;  %732 = vbcast.lane.b32.xlu0 %v730_v7, 256 }
  0xda   : > { %944 = vbcast.lane.b32.xlu1 %v938_v8, 264  ;;  %940 = vbcast.lane.b32.xlu0 %v938_v8, 256 }
  0xde   : > { %747 = vbcast.lane.b32.xlu1 %v741_v9, 264  ;;  %743 = vbcast.lane.b32.xlu0 %v741_v9, 256 }
  0xe2   : > { %955 = vbcast.lane.b32.xlu1 %v949_v10, 264  ;;  %951 = vbcast.lane.b32.xlu0 %v949_v10, 256 }
  0xe6   : > { %868 = vbcast.lane.b32.xlu1 %v862_v12, 264  ;;  %864 = vbcast.lane.b32.xlu0 %v862_v12, 256 }
  0xea   : > { %1076 = vbcast.lane.b32.xlu1 %v1070_v13, 264  ;;  %1072 = vbcast.lane.b32.xlu0 %v1070_v13, 256 }
  0xee   : > { %879 = vbcast.lane.b32.xlu1 %v873_v18, 264  ;;  %875 = vbcast.lane.b32.xlu0 %v873_v18, 256 }
  0xf2   : > { %1087 = vbcast.lane.b32.xlu1 %v1081_v19, 264  ;;  %1083 = vbcast.lane.b32.xlu0 %v1081_v19, 256 }
  0xf6   : > { %758 = vbcast.lane.b32.xlu1 %v752_v20, 264  ;;  %754 = vbcast.lane.b32.xlu0 %v752_v20, 256 }
  0xfa   : > { %966 = vbcast.lane.b32.xlu1 %v960_v22, 264  ;;  %962 = vbcast.lane.b32.xlu0 %v960_v22, 256  ;;  %v2561_v22 = vmov 0.0  }
  0xfb   : > { %v2265_v41 = vsel %vm2762_vm10, 1.0, %v2561_v22 }
  0xfe   : > { %769 = vbcast.lane.b32.xlu1 %v763_v23, 264  ;;  %765 = vbcast.lane.b32.xlu0 %v763_v23, 256  ;;  %v2264_v23 = vsel %vm2751_vm6, 1.0, %v2561_v22  ;;  %vm1578_vm6 = vcmp.eq.s32.totalorder %v2738_v32, %v2833_v29 }
 0x102   : > { %977 = vbcast.lane.b32.xlu1 %v971_v24, 264  ;;  %973 = vbcast.lane.b32.xlu0 %v971_v24, 256 }
 0x106   : > { %780 = vbcast.lane.b32.xlu1 %v774_v25, 264  ;;  %776 = vbcast.lane.b32.xlu0 %v774_v25, 256 }
 0x10a   : > { %988 = vbcast.lane.b32.xlu1 %v982_v26, 264  ;;  %984 = vbcast.lane.b32.xlu0 %v982_v26, 256 }
 0x10e   : > { %791 = vbcast.lane.b32.xlu1 %v785_v27, 264  ;;  %787 = vbcast.lane.b32.xlu0 %v785_v27, 256 }
 0x112   : > { %999 = vbcast.lane.b32.xlu1 %v993_v28, 264  ;;  %995 = vbcast.lane.b32.xlu0 %v993_v28, 256  ;;  %v1597_v28 = vld [vmem:[%s3192_s10 + $0x10] sm:$0xff] }
 0x116   : > { %802 = vbcast.lane.b32.xlu1 %v796_v31, 264  ;;  %798 = vbcast.lane.b32.xlu0 %v796_v31, 256 }
 0x118   : > { %v821_v33 = vpop.permute.xlu0 %820  ;;  %v825_v35 = vpop.permute.xlu1 %824 }
 0x119   : > { %vm901_vm1 = vcmp.eq.s32.totalorder %v2738_v32, %v821_v33  ;;  %vm902_vm4 = vcmp.eq.s32.totalorder %v2738_v32, %v825_v35 }
 0x11a   : > { %1010 = vbcast.lane.b32.xlu1 %v1004_v36, 264  ;;  %1006 = vbcast.lane.b32.xlu0 %v1004_v36, 256 }
 0x11c   : > { %v1029_v37 = vpop.permute.xlu0 %1028  ;;  %v1033_v38 = vpop.permute.xlu1 %1032 }
 0x11d   : > { %vm1109_vm2 = vcmp.eq.s32.totalorder %v2738_v32, %v1029_v37  ;;  %vm1110_vm3 = vcmp.eq.s32.totalorder %v2738_v32, %v1033_v38 }
 0x11e   : > { %813 = vbcast.lane.b32.xlu1 %v2778_v56, 264  ;;  %809 = vbcast.lane.b32.xlu0 %v2778_v56, 256  ;;  %vm1141_vm5 = vmor %vm901_vm1, %vm1109_vm2 }
 0x11f   : > { %vm1142_vm7 = vmor %vm902_vm4, %vm1110_vm3 }
 0x120   : > { %v832_v34 = vpop.permute.xlu0 %831  ;;  %vm2252_vm8 = vmpackc.low %vm1142_vm7, %vm1141_vm5  ;;  %v836_v39 = vpop.permute.xlu1 %835 }
 0x121   : > { %2354 = vmatprep.mubr.msk.bf16.mxu1 %vm2252_vm8, %v2560_v40  ;;  %vm903_vm9 = vcmp.eq.s32.totalorder %v2738_v32, %v832_v34  ;;  %vm904_vm13 = vcmp.eq.s32.totalorder %v2738_v32, %v836_v39 }
 0x122   : > { %1021 = vbcast.lane.b32.xlu1 %v2781_v57, 264  ;;  %1017 = vbcast.lane.b32.xlu0 %v2781_v57, 256 }
 0x124   : > { %v1040_v42 = vpop.permute.xlu0 %1039  ;;  %v1044_v43 = vpop.permute.xlu1 %1043 }
 0x125   : > { %vm1111_vm11 = vcmp.eq.s32.totalorder %v2738_v32, %v1040_v42  ;;  %vm1112_vm12 = vcmp.eq.s32.totalorder %v2738_v32, %v1044_v43 }
 0x126   : > { %vm1143_vm14 = vmor %vm903_vm9, %vm1111_vm11 }
 0x127   : > { %vm1144_vm0 = vmor %vm904_vm13, %vm1112_vm12 }
 0x128   : > { %vm2254_vm1 = vmpackc.low %vm1144_vm0, %vm1143_vm14  ;;  %v711_v45 = vpop.permute.xlu0 %710  ;;  %v715_v46 = vpop.permute.xlu1 %714 }
 0x129   : > { %2355 = vmatmul.mubr.msk.bf16.vlgmr.msra.gmra.mrb[0].mxu1 %vm2254_vm1, %v2560_v40  ;;  %vm881_vm2 = vcmp.eq.s32.totalorder %v2738_v32, %v711_v45  ;;  %vm882_vm5 = vcmp.eq.s32.totalorder %v2738_v32, %v715_v46 }
 0x12a   : > { %2387 = vmatpush3.bf16.msra.mxu1 %v2820_v17 }
 0x12b   : > { %2370 = vmatprep.subr.mxu1 %v1486_v44 }
 0x12c   : > { %v919_v51 = vpop.permute.xlu0 %918  ;;  %v923_v52 = vpop.permute.xlu1 %922 }
 0x12d   : > { %vm1089_vm3 = vcmp.eq.s32.totalorder %v2738_v32, %v919_v51  ;;  %vm1090_vm4 = vcmp.eq.s32.totalorder %v2738_v32, %v923_v52 }
 0x12e   : > { %vm1121_vm7 = vmor %vm881_vm2, %vm1089_vm3  ;;  %2371 = vmatpush3.msra.mxu1 %v1486_v44 }
 0x12f   : > { %vm1122_vm8 = vmor %vm882_vm5, %vm1090_vm4  ;;  %2389 = vmatprep.subr.bf16.mxu1 %v2865_v50 }
 0x130   : > { %v722_v53 = vpop.permute.xlu0 %721  ;;  %vm2232_vm9 = vmpackc.low %vm1122_vm8, %vm1121_vm7  ;;  %v726_v55 = vpop.permute.xlu1 %725 }
 0x131   : > { %2334 = vmatprep.mubr.msk.bf16.mxu0 %vm2232_vm9, %v2560_v40  ;;  %vm883_vm11 = vcmp.eq.s32.totalorder %v2738_v32, %v722_v53  ;;  %vm884_vm14 = vcmp.eq.s32.totalorder %v2738_v32, %v726_v55 }
 0x134   : > { %v930_v56 = vpop.permute.xlu0 %929  ;;  %v934_v57 = vpop.permute.xlu1 %933 }
 0x135   : > { %vm1091_vm12 = vcmp.eq.s32.totalorder %v2738_v32, %v930_v56  ;;  %vm1092_vm13 = vcmp.eq.s32.totalorder %v2738_v32, %v934_v57 }
 0x136   : > { %vm1123_vm0 = vmor %vm883_vm11, %vm1091_vm12 }
 0x137   : > { %vm1124_vm1 = vmor %vm884_vm14, %vm1092_vm13 }
 0x138   : > { %vm2234_vm2 = vmpackc.low %vm1124_vm1, %vm1123_vm0  ;;  %v843_v58 = vpop.permute.xlu0 %842  ;;  %v847_v60 = vpop.permute.xlu1 %846 }
 0x139   : > { %2335 = vmatmul.mubr.msk.bf16.vlgmr.msra.gmra.mrb[0].mxu0 %vm2234_vm2, %v2560_v40  ;;  %vm905_vm3 = vcmp.eq.s32.totalorder %v2738_v32, %v843_v58  ;;  %vm906_vm7 = vcmp.eq.s32.totalorder %v2738_v32, %v847_v60 }
 0x13c   : > { %v1051_v61 = vpop.permute.xlu0 %1050  ;;  %v1055_v62 = vpop.permute.xlu1 %1054 }
 0x13d   : > { %vm1113_vm4 = vcmp.eq.s32.totalorder %v2738_v32, %v1051_v61  ;;  %vm1114_vm5 = vcmp.eq.s32.totalorder %v2738_v32, %v1055_v62 }
 0x13e   : > { %vm1145_vm8 = vmor %vm905_vm3, %vm1113_vm4 }
 0x13f   : > { %vm1146_vm9 = vmor %vm906_vm7, %vm1114_vm5 }
 0x140   : > { %vm2256_vm15 = vmpackc.low %vm1146_vm9, %vm1145_vm8  ;;  %v854_v63 = vpop.permute.xlu0 %853  ;;  %v858_v0 = vpop.permute.xlu1 %857 }
 0x141   : > { %2358 = vmatprep.mubr.msk.bf16.mxu1 %vm2256_vm15, %v2560_v40  ;;  %vm907_vm11 = vcmp.eq.s32.totalorder %v2738_v32, %v854_v63  ;;  %vm908_vm14 = vcmp.eq.s32.totalorder %v2738_v32, %v858_v0 }
 0x144   : > { %v1062_v1 = vpop.permute.xlu0 %1061  ;;  %v1066_v2 = vpop.permute.xlu1 %1065 }
 0x145   : > { %vm1115_vm12 = vcmp.eq.s32.totalorder %v2738_v32, %v1062_v1  ;;  %vm1116_vm13 = vcmp.eq.s32.totalorder %v2738_v32, %v1066_v2 }
 0x146   : > { %vm1147_vm0 = vmor %vm907_vm11, %vm1115_vm12 }
 0x147   : > { %vm1148_vm1 = vmor %vm908_vm14, %vm1116_vm13 }
 0x148   : > { %vm2258_vm2 = vmpackc.low %vm1148_vm1, %vm1147_vm0  ;;  %v733_v3 = vpop.permute.xlu0 %732  ;;  %v737_v4 = vpop.permute.xlu1 %736 }
 0x149   : > { %2359 = vmatmul.mubr.msk.bf16.gmra.mrb[4].mxu1 %vm2258_vm2, %v2560_v40  ;;  %vm885_vm15 = vcmp.eq.s32.totalorder %v2738_v32, %v733_v3  ;;  %vm886_vm5 = vcmp.eq.s32.totalorder %v2738_v32, %v737_v4 }
 0x14c   : > { %v941_v5 = vpop.permute.xlu0 %940  ;;  %v945_v6 = vpop.permute.xlu1 %944 }
 0x14d   : > { %vm1093_vm3 = vcmp.eq.s32.totalorder %v2738_v32, %v941_v5  ;;  %vm1094_vm4 = vcmp.eq.s32.totalorder %v2738_v32, %v945_v6  ;;  %v2562_v5 = vmov 1966171168  }
 0x14e   : > { %vm1125_vm7 = vmor %vm885_vm15, %vm1093_vm3  ;;  %v1715_v6 = vunpack.c.l.s4 %v2562_v5 }
 0x14f   : > { %vm1126_vm8 = vmor %vm886_vm5, %vm1094_vm4 }
 0x150   : > { %vm2236_vm9 = vmpackc.low %vm1126_vm8, %vm1125_vm7  ;;  %v744_v7 = vpop.permute.xlu0 %743  ;;  %v748_v8 = vpop.permute.xlu1 %747 }
 0x151   : > { %2338 = vmatprep.mubr.msk.bf16.mxu0 %vm2236_vm9, %v2560_v40  ;;  %vm887_vm11 = vcmp.eq.s32.totalorder %v2738_v32, %v744_v7  ;;  %vm888_vm14 = vcmp.eq.s32.totalorder %v2738_v32, %v748_v8 }
 0x154   : > { %v952_v9 = vpop.permute.xlu0 %951  ;;  %v956_v10 = vpop.permute.xlu1 %955 }
 0x155   : > { %vm1095_vm12 = vcmp.eq.s32.totalorder %v2738_v32, %v952_v9  ;;  %vm1096_vm13 = vcmp.eq.s32.totalorder %v2738_v32, %v956_v10  ;;  %v1716_v9 = vunpack.c.0.s8 %v1715_v6 }
 0x156   : > { %vm1127_vm0 = vmor %vm887_vm11, %vm1095_vm12 }
 0x157   : > { %vm1128_vm1 = vmor %vm888_vm14, %vm1096_vm13 }
 0x158   : > { %vm2238_vm2 = vmpackc.low %vm1128_vm1, %vm1127_vm0  ;;  %v865_v11 = vpop.permute.xlu0 %864  ;;  %v869_v12 = vpop.permute.xlu1 %868 }
 0x159   : > { %2339 = vmatmul.mubr.msk.bf16.gmra.mrb[4].mxu0 %vm2238_vm2, %v2560_v40  ;;  %vm909_vm15 = vcmp.eq.s32.totalorder %v2738_v32, %v865_v11  ;;  %vm910_vm5 = vcmp.eq.s32.totalorder %v2738_v32, %v869_v12  ;;  %vm1487_vm2 = vcmask 195584   ;;  %v2959_v11 = vsub.s32 %v1716_v9, %v2730_v21 }
 0x15c   : > { %v1073_v13 = vpop.permute.xlu0 %1072  ;;  %v1077_v14 = vpop.permute.xlu1 %1076 }
 0x15d   : > { %vm1117_vm3 = vcmp.eq.s32.totalorder %v2738_v32, %v1073_v13  ;;  %vm1118_vm4 = vcmp.eq.s32.totalorder %v2738_v32, %v1077_v14 }
 0x15e   : > { %vm1149_vm7 = vmor %vm909_vm15, %vm1117_vm3 }
 0x15f   : > { %vm1150_vm8 = vmor %vm910_vm5, %vm1118_vm4 }
 0x160   : > { %vm2260_vm9 = vmpackc.low %vm1150_vm8, %vm1149_vm7  ;;  %v876_v15 = vpop.permute.xlu0 %875  ;;  %v880_v16 = vpop.permute.xlu1 %879 }
 0x161   : > { %2362 = vmatprep.mubr.msk.bf16.mxu1 %vm2260_vm9, %v2560_v40  ;;  %vm911_vm11 = vcmp.eq.s32.totalorder %v2738_v32, %v876_v15  ;;  %vm912_vm14 = vcmp.eq.s32.totalorder %v2738_v32, %v880_v16 }
 0x164   : > { %v1084_v17 = vpop.permute.xlu0 %1083  ;;  %v1088_v18 = vpop.permute.xlu1 %1087 }
 0x165   : > { %vm1119_vm12 = vcmp.eq.s32.totalorder %v2738_v32, %v1084_v17  ;;  %vm1120_vm13 = vcmp.eq.s32.totalorder %v2738_v32, %v1088_v18 }
 0x166   : > { %vm1151_vm0 = vmor %vm911_vm11, %vm1119_vm12  ;;  %vm1588_vm11 = vcmp.eq.s32.totalorder %v2738_v32, %v2835_v30 }
 0x167   : > { %vm1152_vm1 = vmor %vm912_vm14, %vm1120_vm13  ;;  %vm3211_vm13 = vnez %v3210_v54 }
 0x168   : > { %vm2262_vm15 = vmpackc.low %vm1152_vm1, %vm1151_vm0  ;;  %v755_v19 = vpop.permute.xlu0 %754  ;;  %v759_v20 = vpop.permute.xlu1 %758  ;;  %v2268_v31 = vsel %vm3211_vm13, 1.0, %v2561_v22 }
 0x169   : > { %2363 = vmatmul.mubr.msk.bf16.gmra.mrb[8].mxu1 %vm2262_vm15, %v2560_v40  ;;  %vm889_vm3 = vcmp.eq.s32.totalorder %v2738_v32, %v755_v19  ;;  %vm890_vm7 = vcmp.eq.s32.totalorder %v2738_v32, %v759_v20  ;;  %vm1590_vm10 = vmor %vm1578_vm6, %vm1588_vm11 }
 0x16a   : > { %2372 = vmatprep.mubr.msk.f32.mxu1 %vm1487_vm2, %v2264_v23  ;;  %v2269_v54 = vsel %vm1590_vm10, 1.0, %v2561_v22 }
 0x16c   : > { %v963_v24 = vpop.permute.xlu0 %962  ;;  %v967_v25 = vpop.permute.xlu1 %966 }
 0x16d   : > { %vm1097_vm4 = vcmp.eq.s32.totalorder %v2738_v32, %v963_v24  ;;  %vm1098_vm5 = vcmp.eq.s32.totalorder %v2738_v32, %v967_v25 }
 0x16e   : > { %vm1129_vm8 = vmor %vm889_vm3, %vm1097_vm4 }
 0x16f   : > { %vm1130_vm9 = vmor %vm890_vm7, %vm1098_vm5 }
 0x170   : > { %vm2240_vm12 = vmpackc.low %vm1130_vm9, %vm1129_vm8  ;;  %v766_v26 = vpop.permute.xlu0 %765  ;;  %v770_v27 = vpop.permute.xlu1 %769 }
 0x171   : > { %2342 = vmatprep.mubr.msk.bf16.mxu0 %vm2240_vm12, %v2560_v40  ;;  %2373 = vmatmul.mubr.msk.f32.vlgmr.msra.gmra.mrb[12].mxu1 %vm1487_vm2, %v2265_v41  ;;  %vm891_vm14 = vcmp.eq.s32.totalorder %v2738_v32, %v766_v26  ;;  %vm892_vm15 = vcmp.eq.s32.totalorder %v2738_v32, %v770_v27 }
 0x172   : > { %2391 = vmatpush3.bf16.msra.mxu1 %v2865_v50  ;;  %2381 = vmatprep.mubr.msk.f32.mxu1 %vm1487_vm2, %v2268_v31 }
 0x173   : > { %2379 = vmatprep.subr.mxu1 %v1597_v28 }
 0x174   : > { %v974_v48 = vpop.permute.xlu0 %973  ;;  %v978_v29 = vpop.permute.xlu1 %977 }
 0x175   : > { %vm1099_vm0 = vcmp.eq.s32.totalorder %v2738_v32, %v974_v48  ;;  %vm1100_vm1 = vcmp.eq.s32.totalorder %v2738_v32, %v978_v29 }
 0x176   : > { %vm1131_vm3 = vmor %vm891_vm14, %vm1099_vm0  ;;  %2380 = vmatpush3.msra.mxu1 %v1597_v28 }
 0x177   : > { %vm1132_vm4 = vmor %vm892_vm15, %vm1100_vm1  ;;  %2382 = vmatmul.mubr.msk.f32.vlgmr.msra.gmra.mrb[14].mxu1 %vm1487_vm2, %v2269_v54 }
 0x178   : > { %vm2242_vm5 = vmpackc.low %vm1132_vm4, %vm1131_vm3  ;;  %v777_v30 = vpop.permute.xlu0 %776  ;;  %v781_v33 = vpop.permute.xlu1 %780 }
 0x179   : > { %2343 = vmatmul.mubr.msk.bf16.gmra.mrb[8].mxu0 %vm2242_vm5, %v2560_v40  ;;  %vm893_vm7 = vcmp.eq.s32.totalorder %v2738_v32, %v777_v30  ;;  %vm894_vm6 = vcmp.eq.s32.totalorder %v2738_v32, %v781_v33 }
 0x17c   : > { %v985_v35 = vpop.permute.xlu0 %984  ;;  %v989_v36 = vpop.permute.xlu1 %988 }
 0x17d   : > { %vm1101_vm8 = vcmp.eq.s32.totalorder %v2738_v32, %v985_v35  ;;  %vm1102_vm9 = vcmp.eq.s32.totalorder %v2738_v32, %v989_v36 }
 0x17e   : > { %vm1133_vm11 = vmor %vm893_vm7, %vm1101_vm8 }
 0x17f   : > { %vm1134_vm12 = vmor %vm894_vm6, %vm1102_vm9 }
 0x180   : > { %vm2244_vm13 = vmpackc.low %vm1134_vm12, %vm1133_vm11  ;;  %v788_v37 = vpop.permute.xlu0 %787  ;;  %v792_v38 = vpop.permute.xlu1 %791 }
 0x181   : > { %2346 = vmatprep.mubr.msk.bf16.mxu0 %vm2244_vm13, %v2560_v40  ;;  %vm895_vm2 = vcmp.eq.s32.totalorder %v2738_v32, %v788_v37  ;;  %vm896_vm0 = vcmp.eq.s32.totalorder %v2738_v32, %v792_v38 }
 0x184   : > { %v996_v34 = vpop.permute.xlu0 %995  ;;  %v1000_v39 = vpop.permute.xlu1 %999 }
 0x185   : > { %vm1103_vm10 = vcmp.eq.s32.totalorder %v2738_v32, %v996_v34  ;;  %vm1104_vm14 = vcmp.eq.s32.totalorder %v2738_v32, %v1000_v39 }
 0x186   : > { %vm1135_vm1 = vmor %vm895_vm2, %vm1103_vm10 }
 0x187   : > { %vm1136_vm15 = vmor %vm896_vm0, %vm1104_vm14 }
 0x188   : > { %vm2246_vm3 = vmpackc.low %vm1136_vm15, %vm1135_vm1  ;;  %v799_v42 = vpop.permute.xlu0 %798  ;;  %v803_v43 = vpop.permute.xlu1 %802 }
 0x189   : > { %2347 = vmatmul.mubr.msk.bf16.gmra.mrb[12].mxu0 %vm2246_vm3, %v2560_v40  ;;  %vm897_vm4 = vcmp.eq.s32.totalorder %v2738_v32, %v799_v42  ;;  %vm898_vm8 = vcmp.eq.s32.totalorder %v2738_v32, %v803_v43 }
 0x18c   : > { %v1007_v44 = vpop.permute.xlu0 %1006  ;;  %v1011_v45 = vpop.permute.xlu1 %1010 }
 0x18d   : > { %vm1105_vm5 = vcmp.eq.s32.totalorder %v2738_v32, %v1007_v44  ;;  %vm1106_vm7 = vcmp.eq.s32.totalorder %v2738_v32, %v1011_v45 }
 0x18e   : > { %vm1137_vm9 = vmor %vm897_vm4, %vm1105_vm5 }
 0x18f   : > { %vm1138_vm6 = vmor %vm898_vm8, %vm1106_vm7 }
 0x190   : > { %vm2248_vm11 = vmpackc.low %vm1138_vm6, %vm1137_vm9  ;;  %v810_v46 = vpop.permute.xlu0 %809  ;;  %v814_v47 = vpop.permute.xlu1 %813 }
 0x191   : > { %2350 = vmatprep.mubr.msk.bf16.mxu0 %vm2248_vm11, %v2560_v40  ;;  %vm899_vm12 = vcmp.eq.s32.totalorder %v2738_v32, %v810_v46  ;;  %vm900_vm10 = vcmp.eq.s32.totalorder %v2738_v32, %v814_v47 }
 0x194   : > { %v1018_v49 = vpop.permute.xlu0 %1017  ;;  %v1022_v50 = vpop.permute.xlu1 %1021 }
 0x195   : > { %vm1107_vm13 = vcmp.eq.s32.totalorder %v2738_v32, %v1018_v49  ;;  %vm1108_vm2 = vcmp.eq.s32.totalorder %v2738_v32, %v1022_v50 }
 0x196   : > { %vm1139_vm14 = vmor %vm899_vm12, %vm1107_vm13 }
 0x197   : > { %vm1140_vm0 = vmor %vm900_vm10, %vm1108_vm2 }
 0x198   : > { %vm2250_vm1 = vmpackc.low %vm1140_vm0, %vm1139_vm14 }
 0x199   : > { %2351 = vmatmul.mubr.msk.bf16.gmra.mrb[16].mxu0 %vm2250_vm1, %v2560_v40 }
 0x1fc   : > { %v2356_v51 = vpop.f32.mrb[0].mxu1 }
 0x1fd   : > { %v1411_v52 = vpop.f32.mrb[1].mxu1 }
 0x1fe   : > { %v2357_v53 = vpop.f32.mrb[2].mxu1 }
 0x1ff   : > { %v1414_v55 = vpop.f32.mrb[3].mxu1 }
 0x20c   : > { %v2336_v56 = vpop.f32.mrb[0].mxu0 }
 0x20d   : > { %v1331_v57 = vpop.f32.mrb[1].mxu0 }
 0x20e   : > { %v2337_v58 = vpop.f32.mrb[2].mxu0 }
 0x20f   : > { %v1334_v60 = vpop.f32.mrb[3].mxu0 }
 0x21c   : > { %v2360_v61 = vpop.f32.mrb[4].mxu1 }
 0x21d   : > { %v1427_v62 = vpop.f32.mrb[5].mxu1 }
 0x21e   : > { %v2361_v63 = vpop.f32.mrb[6].mxu1 }
 0x21f   : > { %v1430_v0 = vpop.f32.mrb[7].mxu1 }
 0x22c   : > { %v2340_v1 = vpop.f32.mrb[4].mxu0 }
 0x22d   : > { %v1347_v2 = vpop.f32.mrb[5].mxu0 }
 0x22e   : > { %v2341_v32 = vpop.f32.mrb[6].mxu0 }
 0x22f   : > { %v1350_v3 = vpop.f32.mrb[7].mxu0 }
 0x23c   : > { %v2364_v4 = vpop.f32.mrb[8].mxu1 }
 0x23d   : > { %v1443_v40 = vpop.f32.mrb[9].mxu1 }
 0x23e   : > { %v2365_v7 = vpop.f32.mrb[10].mxu1 }
 0x23f   : > { %v1446_v8 = vpop.f32.mrb[11].mxu1 }
 0x244   : > { %v2956_v10 = vpop.f32.mrb[12].mxu1 }
 0x245   : > { %v2961_v12 = vpop.f32.mrb[13].mxu1  ;;  %v1700_v13 = vadd.f32 %v2956_v10, %v1414_v55  ;;  %v2965_v14 = vadd.f32 %v2956_v10, %v2357_v53  ;;  %v1704_v15 = vadd.f32 %v2956_v10, %v1430_v0  ;;  %v2969_v16 = vadd.f32 %v2956_v10, %v2361_v63 }
 0x246   : > { %v1699_v17 = vadd.f32 %v2961_v12, %v1411_v52  ;;  %v1701_v18 = vadd.f32 %v2356_v51, %v2961_v12  ;;  %v1703_v19 = vadd.f32 %v2961_v12, %v1427_v62  ;;  %v1705_v21 = vadd.f32 %v2360_v61, %v2961_v12 }
 0x247   : > { %v1707_v20 = vadd.f32 %v2961_v12, %v1443_v40  ;;  %v1708_v22 = vadd.f32 %v2956_v10, %v1446_v8  ;;  %v2978_v23 = vadd.f32 %v2364_v4, %v2961_v12  ;;  %v2981_v24 = vadd.f32 %v2956_v10, %v2365_v7 }
 0x248   : > { %v2984_v25 = vadd.f32 %v2961_v12, %v1331_v57  ;;  %v2987_v41 = vadd.f32 %v2956_v10, %v1334_v60  ;;  %v2990_v26 = vadd.f32 %v2336_v56, %v2961_v12  ;;  %v2993_v27 = vadd.f32 %v2956_v10, %v2337_v58 }
 0x249   : > { %v2996_v28 = vadd.f32 %v2961_v12, %v1347_v2  ;;  %v2999_v31 = vadd.f32 %v2956_v10, %v1350_v3  ;;  %v3002_v48 = vadd.f32 %v2340_v1, %v2961_v12  ;;  %v3005_v29 = vadd.f32 %v2956_v10, %v2341_v32 }
 0x24a   : > { %v2383_v54 = vpop.f32.mrb[14].mxu1 }
 0x24b   : > { %v1762_v30 = vcombine.high %v2383_v54, %v2383_v54  ;;  %v1769_v33 = vrot.slane %v2383_v54, %v2959_v11  ;;  %v1670_v35 = vpop.f32.mrb[15].mxu1 }
 0x24c   : > { %v1713_v36 = vcombine.high %v1670_v35, %v1670_v35  ;;  %v1720_v37 = vrot.slane %v1670_v35, %v2959_v11  ;;  %v2344_v38 = vpop.f32.mrb[8].mxu0 }
 0x24d   : > { %v1776_v34 = vrot.slane %v1762_v30, %v2959_v11  ;;  %v1777_v39 = vcombine.high %v1769_v33, %v1769_v33  ;;  %v3012_v42 = vrot.slane %v1769_v33, %v2959_v11  ;;  %v3015_v43 = vadd.f32 %v2344_v38, %v2961_v12  ;;  %v1363_v44 = vpop.f32.mrb[9].mxu0 }
 0x24e   : > { %v3018_v45 = vrot.slane %v1713_v36, %v2959_v11  ;;  %v1728_v46 = vcombine.high %v1720_v37, %v1720_v37  ;;  %v1736_v47 = vrot.slane %v1720_v37, %v2959_v11  ;;  %v3022_v49 = vadd.f32 %v2961_v12, %v1363_v44  ;;  %v3024_v50 = vpop.f32.mrb[10].mxu0 }
 0x24f   : > { %v1778_v51 = vcombine.high %v1776_v34, %v1776_v34  ;;  %v1792_v52 = vrot.slane %v1776_v34, %v2959_v11  ;;  %v3028_v53 = vrot.slane %v1777_v39, %v2959_v11  ;;  %v1807_v55 = vcombine.high %v3012_v42, %v3012_v42  ;;  %v1366_v56 = vpop.f32.mrb[11].mxu0 }
 0x250   : > { %v1729_v57 = vcombine.high %v3018_v45, %v3018_v45  ;;  %v3038_v58 = vrot.slane %v3018_v45, %v2959_v11  ;;  %v1750_v60 = vrot.slane %v1728_v46, %v2959_v11  ;;  %v1758_v61 = vcombine.high %v1736_v47, %v1736_v47 }
 0x251   : > { %v1806_v62 = vrot.slane %v1778_v51, %v2959_v11  ;;  %v1808_v63 = vcombine.high %v1792_v52, %v1792_v52  ;;  %v1809_v0 = vcombine.high %v3028_v53, %v3028_v53  ;;  %v1854_v1 = vrot.slane %v1807_v55, %v2786_v59 }
 0x252   : > { %v1862_v2 = vrot.slane %v1792_v52, %v2786_v59  ;;  %v1760_v32 = vcombine.high %v1750_v60, %v1750_v60  ;;  %v1814_v3 = vrot.slane %v1736_v47, %v2786_v59  ;;  %v1818_v4 = vrot.slane %v1750_v60, %v2786_v59 }
 0x253   : > { %v1810_v5 = vcombine.high %v1806_v62, %v1806_v62  ;;  %v1858_v6 = vrot.slane %v1809_v0, %v2786_v59  ;;  %v1866_v40 = vrot.slane %v1806_v62, %v2786_v59  ;;  %v1870_v7 = vrot.slane %v1808_v63, %v2786_v59 }
 0x254   : > { %v1911_v8 = vadd.f32 %v1854_v1, %v1699_v17  ;;  %v1912_v9 = vadd.f32 %v1854_v1, %v1700_v13  ;;  %v1915_v54 = vadd.f32 %v1862_v2, %v1703_v19  ;;  %v1916_v30 = vadd.f32 %v1862_v2, %v1704_v15 }
 0x255   : > { %v1874_v33 = vrot.slane %v1810_v5, %v2786_v59  ;;  %v1913_v35 = vadd.f32 %v1858_v6, %v1701_v18  ;;  %v1914_v36 = vadd.f32 %v1858_v6, %v2965_v14  ;;  %v1917_v37 = vadd.f32 %v1866_v40, %v1705_v21 }
 0x256   : > { %v1918_v38 = vadd.f32 %v1866_v40, %v2969_v16  ;;  %v1919_v34 = vadd.f32 %v1870_v7, %v1707_v20  ;;  %v1920_v39 = vadd.f32 %v1870_v7, %v1708_v22  ;;  %1943 = vst [vmem:[%s3054_s15 + $0xa0] sm:$0xff] %v1911_v8  ;;  %1944 = vst [vmem:[%s3054_s15 + $0xa8] sm:$0xff] %v1912_v9 }
 0x257   : > { %1947 = vst [vmem:[%s3054_s15 + $0xc0] sm:$0xff] %v1915_v54  ;;  %1948 = vst [vmem:[%s3054_s15 + $0xc8] sm:$0xff] %v1916_v30  ;;  %v1822_v13 = vrot.slane %v1758_v61, %v2786_v59  ;;  %v1921_v14 = vadd.f32 %v1874_v33, %v2978_v23  ;;  %v1922_v15 = vadd.f32 %v1874_v33, %v2981_v24 }
 0x258   : > { %1945 = vst [vmem:[%s3054_s15 + $0xb0] sm:$0xff] %v1913_v35  ;;  %1946 = vst [vmem:[%s3054_s15 + $0xb8] sm:$0xff] %v1914_v36  ;;  %v1826_v16 = vrot.slane %v1760_v32, %v2786_v59  ;;  %v1891_v17 = vadd.f32 %v1814_v3, %v2984_v25  ;;  %v1892_v18 = vadd.f32 %v1814_v3, %v2987_v41 }
 0x259   : > { %1949 = vst [vmem:[%s3054_s15 + $0xd0] sm:$0xff] %v1917_v37  ;;  %1950 = vst [vmem:[%s3054_s15 + $0xd8] sm:$0xff] %v1918_v38  ;;  %v1893_v19 = vadd.f32 %v1818_v4, %v2990_v26  ;;  %v1894_v21 = vadd.f32 %v1818_v4, %v2993_v27  ;;  %v1895_v20 = vadd.f32 %v1822_v13, %v2996_v28 }
 0x25a   : > { %1951 = vst [vmem:[%s3054_s15 + $0xe0] sm:$0xff] %v1919_v34  ;;  %1952 = vst [vmem:[%s3054_s15 + $0xe8] sm:$0xff] %v1920_v39  ;;  %v1896_v22 = vadd.f32 %v1822_v13, %v2999_v31  ;;  %v1897_v23 = vadd.f32 %v1826_v16, %v3002_v48  ;;  %v1898_v24 = vadd.f32 %v1826_v16, %v3005_v29 }
 0x25b   : > { %1953 = vst [vmem:[%s3054_s15 + $0xf0] sm:$0xff] %v1921_v14  ;;  %1954 = vst [vmem:[%s3054_s15 + $0xf8] sm:$0xff] %v1922_v15  ;;  %v1757_v25 = vrot.slane %v1729_v57, %v2959_v11  ;;  %v1830_v41 = vrot.slane %v3038_v58, %v2786_v59  ;;  %v1690_v26 = vadd.f32 %v2956_v10, %v3024_v50 }
 0x25c   : > { %1923 = vst [vmem:[%s3054_s15] sm:$0xff] %v1891_v17  ;;  %1924 = vst [vmem:[%s3054_s15 + $0x8] sm:$0xff] %v1892_v18  ;;  %v1688_v27 = vadd.f32 %v2956_v10, %v1366_v56  ;;  %v1759_v28 = vcombine.high %v3038_v58, %v3038_v58  ;;  %v2348_v44 = vpop.f32.mrb[12].mxu0  ;;  %v1850_v1 = vrot.slane %v3028_v53, %v2786_v59 }
 0x25d   : > { %1925 = vst [vmem:[%s3054_s15 + $0x10] sm:$0xff] %v1893_v19  ;;  %1926 = vst [vmem:[%s3054_s15 + $0x18] sm:$0xff] %v1894_v21  ;;  %v1834_v11 = vrot.slane %v1757_v25, %v2786_v59  ;;  %v1761_v31 = vcombine.high %v1757_v25, %v1757_v25  ;;  %v1899_v48 = vadd.f32 %v1830_v41, %v3022_v49  ;;  %v1379_v51 = vpop.f32.mrb[13].mxu0 }
 0x25e   : > { %1927 = vst [vmem:[%s3054_s15 + $0x20] sm:$0xff] %v1895_v20  ;;  %1928 = vst [vmem:[%s3054_s15 + $0x28] sm:$0xff] %v1896_v22  ;;  %v1900_v29 = vadd.f32 %v1830_v41, %v1688_v27  ;;  %v1693_v47 = vadd.f32 %v2348_v44, %v2961_v12  ;;  %v1691_v52 = vadd.f32 %v2961_v12, %v1379_v51  ;;  %v2349_v55 = vpop.f32.mrb[14].mxu0 }
 0x25f   : > { %1929 = vst [vmem:[%s3054_s15 + $0x30] sm:$0xff] %v1897_v23  ;;  %1930 = vst [vmem:[%s3054_s15 + $0x38] sm:$0xff] %v1898_v24  ;;  %v1901_v45 = vadd.f32 %v1834_v11, %v3015_v43  ;;  %v1902_v46 = vadd.f32 %v1834_v11, %v1690_v26  ;;  %v1842_v50 = vrot.slane %v1761_v31, %v2786_v59  ;;  %v1382_v57 = vpop.f32.mrb[15].mxu0 }
 0x260   : > { %1931 = vst [vmem:[%s3054_s15 + $0x40] sm:$0xff] %v1899_v48  ;;  %1932 = vst [vmem:[%s3054_s15 + $0x48] sm:$0xff] %v1900_v29  ;;  %v1838_v49 = vrot.slane %v1759_v28, %v2786_v59  ;;  %v1694_v56 = vadd.f32 %v2956_v10, %v2349_v55  ;;  %v1692_v60 = vadd.f32 %v2956_v10, %v1382_v57 }
 0x261   : > { %1933 = vst [vmem:[%s3054_s15 + $0x50] sm:$0xff] %v1901_v45  ;;  %1934 = vst [vmem:[%s3054_s15 + $0x58] sm:$0xff] %v1902_v46  ;;  %v1905_v43 = vadd.f32 %v1842_v50, %v1693_v47  ;;  %v1846_v3 = vrot.slane %v3012_v42, %v2786_v59 }
 0x262   : > { %v1903_v58 = vadd.f32 %v1838_v49, %v1691_v52  ;;  %v1906_v61 = vadd.f32 %v1842_v50, %v1694_v56  ;;  %v1904_v62 = vadd.f32 %v1838_v49, %v1692_v60 }
 0x263   : > { %1937 = vst [vmem:[%s3054_s15 + $0x70] sm:$0xff] %v1905_v43 }
 0x264   : > { %1935 = vst [vmem:[%s3054_s15 + $0x60] sm:$0xff] %v1903_v58  ;;  %1938 = vst [vmem:[%s3054_s15 + $0x78] sm:$0xff] %v1906_v61 }
 0x265   : > { %1936 = vst [vmem:[%s3054_s15 + $0x68] sm:$0xff] %v1904_v62 }
 0x26c   : > { %v2352_v63 = vpop.f32.mrb[16].mxu0 }
 0x26d   : > { %v1697_v0 = vadd.f32 %v2352_v63, %v2961_v12  ;;  %v1395_v2 = vpop.f32.mrb[17].mxu0 }
 0x26e   : > { %v1695_v32 = vadd.f32 %v2961_v12, %v1395_v2  ;;  %v2353_v4 = vpop.f32.mrb[18].mxu0 }
 0x26f   : > { %v1909_v5 = vadd.f32 %v1850_v1, %v1697_v0  ;;  %v1698_v6 = vadd.f32 %v2956_v10, %v2353_v4  ;;  %v1398_v40 = vpop.f32.mrb[19].mxu0 }
 0x270   : > { %v1907_v7 = vadd.f32 %v1846_v3, %v1695_v32  ;;  %v1696_v53 = vadd.f32 %v2956_v10, %v1398_v40 }
 0x271   : > { %1941 = vst [vmem:[%s3054_s15 + $0x90] sm:$0xff] %v1909_v5  ;;  %v1910_v8 = vadd.f32 %v1850_v1, %v1698_v6 }
 0x272   : > { %1939 = vst [vmem:[%s3054_s15 + $0x80] sm:$0xff] %v1907_v7  ;;  %v1908_v59 = vadd.f32 %v1846_v3, %v1696_v53 }
 0x273   : > { %1942 = vst [vmem:[%s3054_s15 + $0x98] sm:$0xff] %v1910_v8 }
 0x274   : > { %1940 = vst [vmem:[%s3054_s15 + $0x88] sm:$0xff] %v1908_v59 }
 0x275   : > { %2492 = shalt.err (!%p2489_p5)
}
 0x276   : > { %s2493_s26 = scalar_lea.hbm %s3127_s19, 4096  ;;  %s2497_s14 = scalar_lea.hbm %s3193_s11, 8192 }
 0x277   : > { %p2494_p6 = scmp.ne.s32.totalorder %s3127_s19, %s2493_s26  ;;  %p2498_p10 = scmp.lt.u32.totalorder %s3127_s19, %s3193_s11 }
 0x278   : > { %p2499_p11 = scmp.lt.u32.totalorder %s2497_s14, %s2493_s26  ;;  %p2501_p13 = scmp.lt.u32.totalorder %s2493_s26, %s3127_s19 }
 0x279   : > { %p2495_p7 = pnand %p2494_p6, %p2666_p4 }
 0x27a   : > { %p2500_p12 = por %p2499_p11, %p2498_p10 }
 0x27b   : > { %p2496_p9 = pneg %p2495_p7 }
 0x27c   : > { %p2502_p0 = por %p2501_p13, %p2500_p12 }
 0x27e   : > { %p2503_p1 = pnand %p2502_p0, %p2496_p9 }
 0x280   : > { %2506 = shalt.err (!%p2503_p1)
}
 0x281   : > { %s2564_s24 = smov 128   ;;  %s2565_s25 = smov 8  }
 0x282   : > { %2408 = dma.vmem_to_hbm [thread:$0]  (%p2666_p4), %s3129_s23, 4096, %s3127_s19, %s3136_s20, %s2564_s24, %s2564_s24, %s2565_s25  }
 0x283 PF: > { %p2414_p2 = scmp.ge.s32.totalorder %s2557_s22, 2  ;;  %s1989_s29 = sand.u32 1, %s2537_s17  }
 0x284   : > { %s1990_s30 = scalar_lea.sflag [#allocation3], %s1989_s29 }
 0x285   : > { %p2411_p3 = pnand %p2414_p2, %p2673_p8 }
 0x287   : > { %2532 = dma.done.wait (!%p2411_p3), %s1990_s30, 4096  }
 0x288   : > { %2534 = vsyncadd (!%p2411_p3), %s1990_s30, 4294963200  ;;  %s24_s22 = sadd.s32 1, %s2557_s22   ;;  %s3213_s13 = sld [smem:[#allocation5_spill]] }
 0x289   : > { %p21_p5 = scmp.ge.s32.totalorder %s24_s22, 4   ;;  %s3214_s19 = sld [smem:[#allocation9_spill]] }
 0x28a   : > { %s3215_s20 = sld [smem:[#allocation6_spill]]  ;;  %s3216_s21 = sld [smem:[#allocation7_spill]] }
 0x28b   : > { %s3217_s17 = smov %s2541_s18  ;;  %23 = sbr.rel (!%p21_p5) target bundleno = 4 (0x4), region = 120 }
 0x28e   : > { %s3218_s18 = smov %s3213_s13 }
 0x292   :  { %1995 = vsyncpa [#allocation3], 1 }
 0x293   :  { %1997 = vsyncpa [#allocation3 + $0x1], 1 }

</bundles_post_ra>
